<compile_context>
chip_gen: v7x
topology: tpu7x:2x2x1
jax: 0.10.0
libtpu: 0.0.40
codegen_flags: <defaults>
</compile_context>

<pallas_src>
import functools

import jax
import jax.numpy as jnp
from jax import lax
from jax.experimental import pallas as pl
from jax.experimental.pallas import tpu as pltpu


def _round_up(x, m):
    return ((x + m - 1) // m) * m


def _vmem_capacity_bytes():
    try:
        return int(pltpu.get_tpu_info().vmem_capacity_bytes)
    except Exception:
        return 64 * 1024 * 1024          # v7x per-TC size: safe lower bound


def _pick_row_tile(Ho, Wp, Cin, Cout, in_itemsize, out_itemsize):
    """Output rows per grid step, chosen against a derived VMEM budget.

    Returns (TH, T, est_bytes) with T = ceil(Ho / TH); Ho is padded up to
    T*TH by the wrapper (junk rows are sliced off), so TH never has to be a
    divisor of Ho and we never fall back to whole-image tiles.
    """
    budget = int(_vmem_capacity_bytes() * 0.45)   # headroom for compiler scratch

    def usage(th):
        win = (th + 3) * Wp
        shl = (th + 2) * Wp
        return ((2 * Cin * win            # double-buffered input window
                 + 2 * Cin * shl)         # dx = 1, 2 shifted copies
                * in_itemsize
                + 2 * Cout * th * Wp * out_itemsize)   # double-buffered out block

    cap = min(Ho, 256)
    if Ho >= 16:
        cap = min(cap, max(8, Ho // 2))   # keep >=2 row tiles (pipelining / 2nd TC)
    th = 1
    for cand in range(cap, 0, -1):
        if usage(cand) <= budget:
            th = cand
            break
    # Prefer a nearby exact divisor of Ho (avoids padded junk rows); otherwise
    # keep `th` and let the wrapper pad Ho up.
    for cand in range(th, 0, -1):
        if Ho % cand == 0:
            if th - cand <= max(2, th // 4):
                th = cand
            break
    t = -(-Ho // th)
    return th, t, usage(th)


def _pick_lane_chunk(row_block, Cin, Cout):
    """Lane chunk for register accumulation: (Cout, CH) f32 must stay in vregs."""
    limit = max(128, (16384 // max(Cin, Cout, 1)) // 128 * 128)
    for c in (1024, 512, 256, 128):
        if c <= limit and row_block % c == 0:
            return c
    return 128                            # row_block is always a multiple of 128


@functools.partial(jax.jit, static_argnames=("ratio",))
def upconv_forward(x_nchw, weight_oihw, ratio=2):
    """Matches PyTorch `upconv.forward`: nearest-up(ratio) -> conv3x3(pad=1) -> ELU.

    x_nchw      : (N, Cin, H, W)
    weight_oihw : (Cout, Cin, 3, 3)   (PyTorch Conv2d layout, no bias)
    returns     : (N, Cout, ratio*H, ratio*W)
    """
    N, Cin, H, W = x_nchw.shape
    Cout = weight_oihw.shape[0]
    Ho, Wo = H * ratio, W * ratio
    in_itemsize = jnp.dtype(x_nchw.dtype).itemsize
    out_itemsize = in_itemsize

    # Lane-aligned padded row stride (>= Wo + 2 for the conv halo).  Multiple of
    # 128 so every dy*Wp tap offset is a whole number of vreg lanes; the extra
    # right-pad columns are junk/zero and sliced off at the end.
    Wp = _round_up(Wo + 2, 128)

    TH, T, vmem_est = _pick_row_tile(Ho, Wp, Cin, Cout, in_itemsize, out_itemsize)
    Ho_p = TH * T                     # row-padded output height (junk rows sliced)
    Hp = Ho_p + 3                     # 1 top pad row + >=2 bottom pad rows
    row_block = TH * Wp               # flat output elements per grid step
    win = (TH + 3) * Wp               # input window incl. 2-row conv halo
    shift_len = (TH + 2) * Wp         # shifted copies cover all 9 tap windows

    CH = _pick_lane_chunk(row_block, Cin, Cout)
    NC = row_block // CH              # statically unrolled chunk loop

    # Split the row tiles into G groups per image so the outer ("parallel")
    # grid axis has >=2 steps even when N == 1 (keeps the 2nd TensorCore busy
    # on v7x).  The DMA prefetch chain only runs along the inner axis.
    G = 2 if (N == 1 and T >= 2 and T % 2 == 0) else 1
    TI = T // G
    OUTER = N * G

    # --- wrapper glue (NCHW end-to-end, no transposes) -----------------------
    up = jnp.repeat(jnp.repeat(x_nchw, ratio, axis=2), ratio, axis=3)
    xp = jnp.pad(up, ((0, 0), (0, 0), (1, Ho_p - Ho + 2), (1, Wp - Wo - 1)))
    xf = xp.reshape(N, Cin, Hp * Wp)                 # free row-major reshape
    # OIHW -> (tap, Cout, Cin), tap = dy*3 + dx; stays resident in VMEM.
    wt = jnp.transpose(weight_oihw, (2, 3, 0, 1)).reshape(9, Cout, Cin)

    def kernel(xf_hbm, w_ref, o_ref, xwin, xsh, dma_sem):
        o = pl.program_id(0)
        i = pl.program_id(1)
        if G == 1:
            n, t = o, i
        else:
            n = o // G
            t = (o % G) * TI + i
        slot = i % 2

        def issue_fetch(tt, s):
            pltpu.make_async_copy(
                xf_hbm.at[n, :, pl.ds(tt * row_block, win)],
                xwin.at[s], dma_sem.at[s]).start()

        # First tile of this (image, group): nothing prefetched yet.
        @pl.when(i == 0)
        def _():
            issue_fetch(t, 0)

        # Wait for the current tile's window (issued above at i==0, otherwise
        # by the previous grid step's prefetch).
        pltpu.make_async_copy(
            xf_hbm.at[n, :, pl.ds(t * row_block, win)],
            xwin.at[slot], dma_sem.at[slot]).wait()

        # Prefetch the next tile's window into the other slot; it lands in the
        # background while this tile's matmuls / ELU run.
        @pl.when(i + 1 < TI)
        def _():
            issue_fetch(t + 1, 1 - slot)

        # Lane-shifted copies for dx = 1, 2: after this every tap operand is a
        # 128-aligned slice (dy*Wp is a multiple of 128).
        for d in (1, 2):
            xsh[d - 1] = xwin[slot, :, pl.ds(d, shift_len)]

        # 3x3 conv = 9 taps of (Cout,Cin)@(Cin,CH) MXU matmuls, accumulated in
        # registers per lane chunk; ELU fused; one store per chunk.
        for c in range(NC):
            s0 = c * CH
            acc = jnp.zeros((Cout, CH), jnp.float32)
            for dy in range(3):
                base = dy * Wp + s0
                taps = (
                    xwin[slot, :, pl.ds(base, CH)],   # dx = 0 (already aligned)
                    xsh[0, :, pl.ds(base, CH)],       # dx = 1
                    xsh[1, :, pl.ds(base, CH)],       # dx = 2
                )
                for dx in range(3):
                    acc = acc + jnp.dot(w_ref[dy * 3 + dx], taps[dx],
                                        preferred_element_type=jnp.float32)
            # ELU (alpha=1). Clamp the dead branch so exp never overflows; the
            # clamped exp(x)-1 matches expm1-based ELU to f32 accuracy here.
            neg = jnp.exp(jnp.minimum(acc, 0.0)) - 1.0
            out = jnp.where(acc > 0.0, acc, neg)
            o_ref[0, :, pl.ds(s0, CH)] = out.astype(o_ref.dtype)

    if G == 1:
        out_map = lambda o, i: (o, 0, i)
    else:
        out_map = lambda o, i: (o // G, 0, (o % G) * TI + i)

    vmem_limit = int(min(_vmem_capacity_bytes() * 3 // 4,
                         max(vmem_est * 2, 32 * 1024 * 1024)))

    out_flat = pl.pallas_call(
        kernel,
        out_shape=jax.ShapeDtypeStruct((N, Cout, Ho_p * Wp), x_nchw.dtype),
        grid_spec=pltpu.PrefetchScalarGridSpec(
            num_scalar_prefetch=0,
            grid=(OUTER, TI),
            in_specs=[
                pl.BlockSpec(memory_space=pl.ANY),                 # image stays in HBM
                pl.BlockSpec((9, Cout, Cin), lambda o, i: (0, 0, 0)),
            ],
            out_specs=pl.BlockSpec((1, Cout, row_block), out_map),
            scratch_shapes=[
                pltpu.VMEM((2, Cin, win), x_nchw.dtype),           # 2-slot input window
                pltpu.VMEM((2, Cin, shift_len), x_nchw.dtype),     # dx = 1, 2 shifts
                pltpu.SemaphoreType.DMA((2,)),
            ]),
        compiler_params=pltpu.CompilerParams(
            dimension_semantics=("parallel", "arbitrary"),
            vmem_limit_bytes=vmem_limit),
    )(xf, wt)

    # Drop padded rows / right-pad columns (free reshape + one slice).
    out = out_flat.reshape(N, Cout, Ho_p, Wp)[:, :, :Ho, :Wo]
    return out


def _reference_upconv(x_nchw, weight_oihw, ratio=2):
    """Pure-JAX reference (mirrors the PyTorch forward)."""
    up = jnp.repeat(jnp.repeat(x_nchw, ratio, axis=2), ratio, axis=3)
    out = lax.conv_general_dilated(
        up.astype(jnp.float32), weight_oihw.astype(jnp.float32),
        window_strides=(1, 1), padding=((1, 1), (1, 1)),
        dimension_numbers=("NCHW", "OIHW", "NCHW"))
    return jnp.where(out > 0, out, jnp.exp(out) - 1.0)


if __name__ == "__main__":
    # Small, module-consistent shapes: batch=2, in_channels=4, out_channels=8,
    # spatial=16x16, ratio=2  ->  2 row-tiles per image, grid=(2, 2).
    N, Cin, Cout, H, W, ratio = 2, 4, 8, 16, 16, 2

    key = jax.random.PRNGKey(0)
    kx, kw = jax.random.split(key)
    x = jax.random.normal(kx, (N, Cin, H, W), dtype=jnp.float32)
    # Deterministic Conv2d-style init (kaiming-uniform-ish bound), no bias.
    fan_in = Cin * 3 * 3
    bound = 1.0 / (fan_in ** 0.5)
    weight = jax.random.uniform(kw, (Cout, Cin, 3, 3),
                                minval=-bound, maxval=bound,
                                dtype=jnp.float32)

    out = upconv_forward(x, weight, ratio=ratio)
    out = jax.block_until_ready(out)

    ref = _reference_upconv(x, weight, ratio=ratio)
    assert out.shape == (N, Cout, H * ratio, W * ratio)
    max_err = float(jnp.max(jnp.abs(out - ref)))
    assert jnp.allclose(out, ref, atol=1e-4, rtol=1e-4), max_err

    print("KERNEL_OK")
</pallas_src>

<mosaic_0001>
module attributes {stable_mosaic.version = 11 : i64} {
  func.func @kernel(%arg0: i32, %arg1: i32, %arg2: memref<2x4x4480xf32, #tpu.memory_space<any>>, %arg3: memref<9x8x4xf32, #tpu.memory_space<vmem>>, %arg4: memref<1x8x2048xf32, #tpu.memory_space<vmem>>, %arg5: memref<2x4x2432xf32, #tpu.memory_space<vmem>>, %arg6: memref<2x4x2304xf32, #tpu.memory_space<vmem>>, %arg7: memref<2x!tpu.dma_semaphore, #tpu.memory_space<semaphore_mem>>) attributes {dimension_semantics = [#tpu.dimension_semantics<parallel>, #tpu.dimension_semantics<arbitrary>], iteration_bounds = array<i64: 2, 2>, scalar_prefetch = 0 : i64, scratch_operands = 3 : i64, tpu.core_type = #tpu.core_type<tc>, window_params = [{}, {pipeline_mode = #tpu.pipeline_mode<synchronous>, transform_indices = @transform_1, window_bounds = array<i64: 9, 8, 4>}, {transform_indices = @transform_2, window_bounds = array<i64: 1, 8, 2048>}]} {
    %c2_i32 = arith.constant 2 : i32
    %c0_i32 = arith.constant 0 : i32
    %0 = arith.cmpi eq, %c2_i32, %c0_i32 : i32
    %c1_i32 = arith.constant 1 : i32
    %1 = arith.select %0, %c1_i32, %c2_i32 : i32
    %2 = arith.remsi %arg1, %1 : i32
    %c0_i32_0 = arith.constant 0 : i32
    %3 = arith.cmpi ne, %2, %c0_i32_0 : i32
    %c0_i32_1 = arith.constant 0 : i32
    %4 = arith.cmpi slt, %2, %c0_i32_1 : i32
    %c0_i32_2 = arith.constant 0 : i32
    %5 = arith.cmpi slt, %1, %c0_i32_2 : i32
    %6 = arith.xori %4, %5 : i1
    %7 = arith.andi %6, %3 : i1
    %8 = arith.addi %2, %1 : i32
    %9 = arith.select %7, %8, %2 : i32
    %c0_i32_3 = arith.constant 0 : i32
    %10 = arith.cmpi eq, %arg1, %c0_i32_3 : i32
    %11 = arith.extui %10 : i1 to i32
    %c0_i32_4 = arith.constant 0 : i32
    %12 = arith.cmpi ne, %11, %c0_i32_4 : i32
    scf.if %12 {
      %c2048_i32_140 = arith.constant 2048 : i32
      %174 = arith.muli %arg1, %c2048_i32_140 : i32
      %c0_i32_141 = arith.constant 0 : i32
      %c0_i32_142 = arith.constant 0 : i32
      %c0_i32_143 = arith.constant 0 : i32
      %175 = tpu.memref_slice %arg2[%arg0, %c0_i32_143, %174] : memref<2x4x4480xf32, #tpu.memory_space<any>> -> memref<1x4x2432xf32, #tpu.memory_space<any>>
      %176 = tpu.memref_squeeze %175 : memref<1x4x2432xf32, #tpu.memory_space<any>> -> memref<4x2432xf32, #tpu.memory_space<any>>
      %c0_i32_144 = arith.constant 0 : i32
      %c0_i32_145 = arith.constant 0 : i32
      %177 = tpu.memref_slice %arg5[%c0_i32_141, %c0_i32_144, %c0_i32_145] : memref<2x4x2432xf32, #tpu.memory_space<vmem>> -> memref<1x4x2432xf32, #tpu.memory_space<vmem>>
      %178 = tpu.memref_squeeze %177 : memref<1x4x2432xf32, #tpu.memory_space<vmem>> -> memref<4x2432xf32, #tpu.memory_space<vmem>>
      %179 = tpu.memref_slice %arg7[%c0_i32_142] : memref<2x!tpu.dma_semaphore, #tpu.memory_space<semaphore_mem>> -> memref<1x!tpu.dma_semaphore, #tpu.memory_space<semaphore_mem>>
      %180 = tpu.memref_squeeze %179 : memref<1x!tpu.dma_semaphore, #tpu.memory_space<semaphore_mem>> -> memref<!tpu.dma_semaphore, #tpu.memory_space<semaphore_mem>>
      tpu.enqueue_dma source(%176 : memref<4x2432xf32, #tpu.memory_space<any>>) target(%178 : memref<4x2432xf32, #tpu.memory_space<vmem>>) target_semaphore(%180 : memref<!tpu.dma_semaphore, #tpu.memory_space<semaphore_mem>>)
    } else {
    }
    %c2048_i32 = arith.constant 2048 : i32
    %13 = arith.muli %arg1, %c2048_i32 : i32
    %c0_i32_5 = arith.constant 0 : i32
    %14 = tpu.memref_slice %arg2[%arg0, %c0_i32_5, %13] : memref<2x4x4480xf32, #tpu.memory_space<any>> -> memref<1x4x2432xf32, #tpu.memory_space<any>>
    %15 = tpu.memref_squeeze %14 : memref<1x4x2432xf32, #tpu.memory_space<any>> -> memref<4x2432xf32, #tpu.memory_space<any>>
    %c0_i32_6 = arith.constant 0 : i32
    %c0_i32_7 = arith.constant 0 : i32
    %16 = tpu.memref_slice %arg5[%9, %c0_i32_6, %c0_i32_7] : memref<2x4x2432xf32, #tpu.memory_space<vmem>> -> memref<1x4x2432xf32, #tpu.memory_space<vmem>>
    %17 = tpu.memref_squeeze %16 : memref<1x4x2432xf32, #tpu.memory_space<vmem>> -> memref<4x2432xf32, #tpu.memory_space<vmem>>
    %18 = tpu.memref_slice %arg7[%9] : memref<2x!tpu.dma_semaphore, #tpu.memory_space<semaphore_mem>> -> memref<1x!tpu.dma_semaphore, #tpu.memory_space<semaphore_mem>>
    %19 = tpu.memref_squeeze %18 : memref<1x!tpu.dma_semaphore, #tpu.memory_space<semaphore_mem>> -> memref<!tpu.dma_semaphore, #tpu.memory_space<semaphore_mem>>
    tpu.wait_dma2 semaphore(%19 : memref<!tpu.dma_semaphore, #tpu.memory_space<semaphore_mem>>) src(%15 : memref<4x2432xf32, #tpu.memory_space<any>>) dst(%17 : memref<4x2432xf32, #tpu.memory_space<vmem>>)
    %c1_i32_8 = arith.constant 1 : i32
    %20 = arith.addi %arg1, %c1_i32_8 : i32
    %c2_i32_9 = arith.constant 2 : i32
    %21 = arith.cmpi slt, %20, %c2_i32_9 : i32
    %22 = arith.extui %21 : i1 to i32
    %c0_i32_10 = arith.constant 0 : i32
    %23 = arith.cmpi ne, %22, %c0_i32_10 : i32
    scf.if %23 {
      %c1_i32_140 = arith.constant 1 : i32
      %174 = arith.addi %arg1, %c1_i32_140 : i32
      %c1_i32_141 = arith.constant 1 : i32
      %175 = arith.subi %c1_i32_141, %9 : i32
      %c2048_i32_142 = arith.constant 2048 : i32
      %176 = arith.muli %174, %c2048_i32_142 : i32
      %c0_i32_143 = arith.constant 0 : i32
      %177 = tpu.memref_slice %arg2[%arg0, %c0_i32_143, %176] : memref<2x4x4480xf32, #tpu.memory_space<any>> -> memref<1x4x2432xf32, #tpu.memory_space<any>>
      %178 = tpu.memref_squeeze %177 : memref<1x4x2432xf32, #tpu.memory_space<any>> -> memref<4x2432xf32, #tpu.memory_space<any>>
      %c0_i32_144 = arith.constant 0 : i32
      %c0_i32_145 = arith.constant 0 : i32
      %179 = tpu.memref_slice %arg5[%175, %c0_i32_144, %c0_i32_145] : memref<2x4x2432xf32, #tpu.memory_space<vmem>> -> memref<1x4x2432xf32, #tpu.memory_space<vmem>>
      %180 = tpu.memref_squeeze %179 : memref<1x4x2432xf32, #tpu.memory_space<vmem>> -> memref<4x2432xf32, #tpu.memory_space<vmem>>
      %181 = tpu.memref_slice %arg7[%175] : memref<2x!tpu.dma_semaphore, #tpu.memory_space<semaphore_mem>> -> memref<1x!tpu.dma_semaphore, #tpu.memory_space<semaphore_mem>>
      %182 = tpu.memref_squeeze %181 : memref<1x!tpu.dma_semaphore, #tpu.memory_space<semaphore_mem>> -> memref<!tpu.dma_semaphore, #tpu.memory_space<semaphore_mem>>
      tpu.enqueue_dma source(%178 : memref<4x2432xf32, #tpu.memory_space<any>>) target(%180 : memref<4x2432xf32, #tpu.memory_space<vmem>>) target_semaphore(%182 : memref<!tpu.dma_semaphore, #tpu.memory_space<semaphore_mem>>)
    } else {
    }
    %24 = arith.index_cast %9 : i32 to index
    %c0 = arith.constant 0 : index
    %c1 = arith.constant 1 : index
    %25 = vector.load %arg5[%24, %c0, %c1] : memref<2x4x2432xf32, #tpu.memory_space<vmem>>, vector<1x4x2304xf32>
    %26 = vector.shape_cast %25 : vector<1x4x2304xf32> to vector<4x2304xf32>
    %c0_11 = arith.constant 0 : index
    %c0_12 = arith.constant 0 : index
    %c0_13 = arith.constant 0 : index
    %27 = vector.load %arg6[%c0_11, %c0_12, %c0_13] : memref<2x4x2304xf32, #tpu.memory_space<vmem>>, vector<1x4x2304xf32>
    %28 = vector.shape_cast %27 : vector<1x4x2304xf32> to vector<4x2304xf32>
    %29 = vector.shape_cast %26 : vector<4x2304xf32> to vector<1x4x2304xf32>
    tpu.vector_store %arg6[%c0_11, %c0_12, %c0_13], %29 {strides = array<i32>} : memref<2x4x2304xf32, #tpu.memory_space<vmem>>, vector<1x4x2304xf32>,
    %30 = arith.index_cast %9 : i32 to index
    %c0_14 = arith.constant 0 : index
    %c2 = arith.constant 2 : index
    %31 = vector.load %arg5[%30, %c0_14, %c2] : memref<2x4x2432xf32, #tpu.memory_space<vmem>>, vector<1x4x2304xf32>
    %32 = vector.shape_cast %31 : vector<1x4x2304xf32> to vector<4x2304xf32>
    %c1_15 = arith.constant 1 : index
    %c0_16 = arith.constant 0 : index
    %c0_17 = arith.constant 0 : index
    %33 = vector.load %arg6[%c1_15, %c0_16, %c0_17] : memref<2x4x2304xf32, #tpu.memory_space<vmem>>, vector<1x4x2304xf32>
    %34 = vector.shape_cast %33 : vector<1x4x2304xf32> to vector<4x2304xf32>
    %35 = vector.shape_cast %32 : vector<4x2304xf32> to vector<1x4x2304xf32>
    tpu.vector_store %arg6[%c1_15, %c0_16, %c0_17], %35 {strides = array<i32>} : memref<2x4x2304xf32, #tpu.memory_space<vmem>>, vector<1x4x2304xf32>,
    %cst = arith.constant 0.000000e+00 : f32
    %36 = vector.broadcast %cst : f32 to vector<8x1024xf32>
    %37 = arith.index_cast %9 : i32 to index
    %c0_18 = arith.constant 0 : index
    %c0_19 = arith.constant 0 : index
    %38 = vector.load %arg5[%37, %c0_18, %c0_19] : memref<2x4x2432xf32, #tpu.memory_space<vmem>>, vector<1x4x1024xf32>
    %39 = vector.shape_cast %38 : vector<1x4x1024xf32> to vector<4x1024xf32>
    %c0_20 = arith.constant 0 : index
    %c0_21 = arith.constant 0 : index
    %c0_22 = arith.constant 0 : index
    %40 = vector.load %arg6[%c0_20, %c0_21, %c0_22] : memref<2x4x2304xf32, #tpu.memory_space<vmem>>, vector<1x4x1024xf32>
    %41 = vector.shape_cast %40 : vector<1x4x1024xf32> to vector<4x1024xf32>
    %c1_23 = arith.constant 1 : index
    %c0_24 = arith.constant 0 : index
    %c0_25 = arith.constant 0 : index
    %42 = vector.load %arg6[%c1_23, %c0_24, %c0_25] : memref<2x4x2304xf32, #tpu.memory_space<vmem>>, vector<1x4x1024xf32>
    %43 = vector.shape_cast %42 : vector<1x4x1024xf32> to vector<4x1024xf32>
    %c0_26 = arith.constant 0 : index
    %c0_27 = arith.constant 0 : index
    %c0_28 = arith.constant 0 : index
    %44 = vector.load %arg3[%c0_26, %c0_27, %c0_28] : memref<9x8x4xf32, #tpu.memory_space<vmem>>, vector<1x8x4xf32>
    %45 = vector.shape_cast %44 : vector<1x8x4xf32> to vector<8x4xf32>
    %cst_29 = arith.constant dense<0.000000e+00> : vector<8x1024xf32>
    %46 = tpu.matmul %45, %39, %cst_29 {dimension_numbers = #tpu.dot_dimension_numbers<[1], [0], [0], [1], [0, 0, 1, 1], [], []>} : vector<8x4xf32>, vector<4x1024xf32>, vector<8x1024xf32> -> vector<8x1024xf32>
    %47 = arith.addf %36, %46 : vector<8x1024xf32>
    %c1_30 = arith.constant 1 : index
    %c0_31 = arith.constant 0 : index
    %c0_32 = arith.constant 0 : index
    %48 = vector.load %arg3[%c1_30, %c0_31, %c0_32] : memref<9x8x4xf32, #tpu.memory_space<vmem>>, vector<1x8x4xf32>
    %49 = vector.shape_cast %48 : vector<1x8x4xf32> to vector<8x4xf32>
    %cst_33 = arith.constant dense<0.000000e+00> : vector<8x1024xf32>
    %50 = tpu.matmul %49, %41, %cst_33 {dimension_numbers = #tpu.dot_dimension_numbers<[1], [0], [0], [1], [0, 0, 1, 1], [], []>} : vector<8x4xf32>, vector<4x1024xf32>, vector<8x1024xf32> -> vector<8x1024xf32>
    %51 = arith.addf %47, %50 : vector<8x1024xf32>
    %c2_34 = arith.constant 2 : index
    %c0_35 = arith.constant 0 : index
    %c0_36 = arith.constant 0 : index
    %52 = vector.load %arg3[%c2_34, %c0_35, %c0_36] : memref<9x8x4xf32, #tpu.memory_space<vmem>>, vector<1x8x4xf32>
    %53 = vector.shape_cast %52 : vector<1x8x4xf32> to vector<8x4xf32>
    %cst_37 = arith.constant dense<0.000000e+00> : vector<8x1024xf32>
    %54 = tpu.matmul %53, %43, %cst_37 {dimension_numbers = #tpu.dot_dimension_numbers<[1], [0], [0], [1], [0, 0, 1, 1], [], []>} : vector<8x4xf32>, vector<4x1024xf32>, vector<8x1024xf32> -> vector<8x1024xf32>
    %55 = arith.addf %51, %54 : vector<8x1024xf32>
    %56 = arith.index_cast %9 : i32 to index
    %c0_38 = arith.constant 0 : index
    %c128 = arith.constant 128 : index
    %57 = vector.load %arg5[%56, %c0_38, %c128] : memref<2x4x2432xf32, #tpu.memory_space<vmem>>, vector<1x4x1024xf32>
    %58 = vector.shape_cast %57 : vector<1x4x1024xf32> to vector<4x1024xf32>
    %c0_39 = arith.constant 0 : index
    %c0_40 = arith.constant 0 : index
    %c128_41 = arith.constant 128 : index
    %59 = vector.load %arg6[%c0_39, %c0_40, %c128_41] : memref<2x4x2304xf32, #tpu.memory_space<vmem>>, vector<1x4x1024xf32>
    %60 = vector.shape_cast %59 : vector<1x4x1024xf32> to vector<4x1024xf32>
    %c1_42 = arith.constant 1 : index
    %c0_43 = arith.constant 0 : index
    %c128_44 = arith.constant 128 : index
    %61 = vector.load %arg6[%c1_42, %c0_43, %c128_44] : memref<2x4x2304xf32, #tpu.memory_space<vmem>>, vector<1x4x1024xf32>
    %62 = vector.shape_cast %61 : vector<1x4x1024xf32> to vector<4x1024xf32>
    %c3 = arith.constant 3 : index
    %c0_45 = arith.constant 0 : index
    %c0_46 = arith.constant 0 : index
    %63 = vector.load %arg3[%c3, %c0_45, %c0_46] : memref<9x8x4xf32, #tpu.memory_space<vmem>>, vector<1x8x4xf32>
    %64 = vector.shape_cast %63 : vector<1x8x4xf32> to vector<8x4xf32>
    %cst_47 = arith.constant dense<0.000000e+00> : vector<8x1024xf32>
    %65 = tpu.matmul %64, %58, %cst_47 {dimension_numbers = #tpu.dot_dimension_numbers<[1], [0], [0], [1], [0, 0, 1, 1], [], []>} : vector<8x4xf32>, vector<4x1024xf32>, vector<8x1024xf32> -> vector<8x1024xf32>
    %66 = arith.addf %55, %65 : vector<8x1024xf32>
    %c4 = arith.constant 4 : index
    %c0_48 = arith.constant 0 : index
    %c0_49 = arith.constant 0 : index
    %67 = vector.load %arg3[%c4, %c0_48, %c0_49] : memref<9x8x4xf32, #tpu.memory_space<vmem>>, vector<1x8x4xf32>
    %68 = vector.shape_cast %67 : vector<1x8x4xf32> to vector<8x4xf32>
    %cst_50 = arith.constant dense<0.000000e+00> : vector<8x1024xf32>
    %69 = tpu.matmul %68, %60, %cst_50 {dimension_numbers = #tpu.dot_dimension_numbers<[1], [0], [0], [1], [0, 0, 1, 1], [], []>} : vector<8x4xf32>, vector<4x1024xf32>, vector<8x1024xf32> -> vector<8x1024xf32>
    %70 = arith.addf %66, %69 : vector<8x1024xf32>
    %c5 = arith.constant 5 : index
    %c0_51 = arith.constant 0 : index
    %c0_52 = arith.constant 0 : index
    %71 = vector.load %arg3[%c5, %c0_51, %c0_52] : memref<9x8x4xf32, #tpu.memory_space<vmem>>, vector<1x8x4xf32>
    %72 = vector.shape_cast %71 : vector<1x8x4xf32> to vector<8x4xf32>
    %cst_53 = arith.constant dense<0.000000e+00> : vector<8x1024xf32>
    %73 = tpu.matmul %72, %62, %cst_53 {dimension_numbers = #tpu.dot_dimension_numbers<[1], [0], [0], [1], [0, 0, 1, 1], [], []>} : vector<8x4xf32>, vector<4x1024xf32>, vector<8x1024xf32> -> vector<8x1024xf32>
    %74 = arith.addf %70, %73 : vector<8x1024xf32>
    %75 = arith.index_cast %9 : i32 to index
    %c0_54 = arith.constant 0 : index
    %c256 = arith.constant 256 : index
    %76 = vector.load %arg5[%75, %c0_54, %c256] : memref<2x4x2432xf32, #tpu.memory_space<vmem>>, vector<1x4x1024xf32>
    %77 = vector.shape_cast %76 : vector<1x4x1024xf32> to vector<4x1024xf32>
    %c0_55 = arith.constant 0 : index
    %c0_56 = arith.constant 0 : index
    %c256_57 = arith.constant 256 : index
    %78 = vector.load %arg6[%c0_55, %c0_56, %c256_57] : memref<2x4x2304xf32, #tpu.memory_space<vmem>>, vector<1x4x1024xf32>
    %79 = vector.shape_cast %78 : vector<1x4x1024xf32> to vector<4x1024xf32>
    %c1_58 = arith.constant 1 : index
    %c0_59 = arith.constant 0 : index
    %c256_60 = arith.constant 256 : index
    %80 = vector.load %arg6[%c1_58, %c0_59, %c256_60] : memref<2x4x2304xf32, #tpu.memory_space<vmem>>, vector<1x4x1024xf32>
    %81 = vector.shape_cast %80 : vector<1x4x1024xf32> to vector<4x1024xf32>
    %c6 = arith.constant 6 : index
    %c0_61 = arith.constant 0 : index
    %c0_62 = arith.constant 0 : index
    %82 = vector.load %arg3[%c6, %c0_61, %c0_62] : memref<9x8x4xf32, #tpu.memory_space<vmem>>, vector<1x8x4xf32>
    %83 = vector.shape_cast %82 : vector<1x8x4xf32> to vector<8x4xf32>
    %cst_63 = arith.constant dense<0.000000e+00> : vector<8x1024xf32>
    %84 = tpu.matmul %83, %77, %cst_63 {dimension_numbers = #tpu.dot_dimension_numbers<[1], [0], [0], [1], [0, 0, 1, 1], [], []>} : vector<8x4xf32>, vector<4x1024xf32>, vector<8x1024xf32> -> vector<8x1024xf32>
    %85 = arith.addf %74, %84 : vector<8x1024xf32>
    %c7 = arith.constant 7 : index
    %c0_64 = arith.constant 0 : index
    %c0_65 = arith.constant 0 : index
    %86 = vector.load %arg3[%c7, %c0_64, %c0_65] : memref<9x8x4xf32, #tpu.memory_space<vmem>>, vector<1x8x4xf32>
    %87 = vector.shape_cast %86 : vector<1x8x4xf32> to vector<8x4xf32>
    %cst_66 = arith.constant dense<0.000000e+00> : vector<8x1024xf32>
    %88 = tpu.matmul %87, %79, %cst_66 {dimension_numbers = #tpu.dot_dimension_numbers<[1], [0], [0], [1], [0, 0, 1, 1], [], []>} : vector<8x4xf32>, vector<4x1024xf32>, vector<8x1024xf32> -> vector<8x1024xf32>
    %89 = arith.addf %85, %88 : vector<8x1024xf32>
    %c8 = arith.constant 8 : index
    %c0_67 = arith.constant 0 : index
    %c0_68 = arith.constant 0 : index
    %90 = vector.load %arg3[%c8, %c0_67, %c0_68] : memref<9x8x4xf32, #tpu.memory_space<vmem>>, vector<1x8x4xf32>
    %91 = vector.shape_cast %90 : vector<1x8x4xf32> to vector<8x4xf32>
    %cst_69 = arith.constant dense<0.000000e+00> : vector<8x1024xf32>
    %92 = tpu.matmul %91, %81, %cst_69 {dimension_numbers = #tpu.dot_dimension_numbers<[1], [0], [0], [1], [0, 0, 1, 1], [], []>} : vector<8x4xf32>, vector<4x1024xf32>, vector<8x1024xf32> -> vector<8x1024xf32>
    %93 = arith.addf %89, %92 : vector<8x1024xf32>
    %cst_70 = arith.constant 0.000000e+00 : f32
    %94 = vector.broadcast %cst_70 : f32 to vector<8x1024xf32>
    %95 = arith.minimumf %93, %94 : vector<8x1024xf32>
    %96 = math.exp %95 : vector<8x1024xf32>
    %cst_71 = arith.constant 1.000000e+00 : f32
    %97 = vector.broadcast %cst_71 : f32 to vector<8x1024xf32>
    %98 = arith.subf %96, %97 : vector<8x1024xf32>
    %cst_72 = arith.constant 0.000000e+00 : f32
    %99 = vector.broadcast %cst_72 : f32 to vector<8x1024xf32>
    %100 = arith.cmpf ogt, %93, %99 : vector<8x1024xf32>
    %101 = arith.select %100, %93, %98 : vector<8x1024xi1>, vector<8x1024xf32>
    %c0_73 = arith.constant 0 : index
    %c0_74 = arith.constant 0 : index
    %c0_75 = arith.constant 0 : index
    %102 = vector.load %arg4[%c0_73, %c0_74, %c0_75] : memref<1x8x2048xf32, #tpu.memory_space<vmem>>, vector<1x8x1024xf32>
    %103 = vector.shape_cast %102 : vector<1x8x1024xf32> to vector<8x1024xf32>
    %104 = vector.shape_cast %101 : vector<8x1024xf32> to vector<1x8x1024xf32>
    tpu.vector_store %arg4[%c0_73, %c0_74, %c0_75], %104 {strides = array<i32>} : memref<1x8x2048xf32, #tpu.memory_space<vmem>>, vector<1x8x1024xf32>,
    %cst_76 = arith.constant 0.000000e+00 : f32
    %105 = vector.broadcast %cst_76 : f32 to vector<8x1024xf32>
    %106 = arith.index_cast %9 : i32 to index
    %c0_77 = arith.constant 0 : index
    %c1024 = arith.constant 1024 : index
    %107 = vector.load %arg5[%106, %c0_77, %c1024] : memref<2x4x2432xf32, #tpu.memory_space<vmem>>, vector<1x4x1024xf32>
    %108 = vector.shape_cast %107 : vector<1x4x1024xf32> to vector<4x1024xf32>
    %c0_78 = arith.constant 0 : index
    %c0_79 = arith.constant 0 : index
    %c1024_80 = arith.constant 1024 : index
    %109 = vector.load %arg6[%c0_78, %c0_79, %c1024_80] : memref<2x4x2304xf32, #tpu.memory_space<vmem>>, vector<1x4x1024xf32>
    %110 = vector.shape_cast %109 : vector<1x4x1024xf32> to vector<4x1024xf32>
    %c1_81 = arith.constant 1 : index
    %c0_82 = arith.constant 0 : index
    %c1024_83 = arith.constant 1024 : index
    %111 = vector.load %arg6[%c1_81, %c0_82, %c1024_83] : memref<2x4x2304xf32, #tpu.memory_space<vmem>>, vector<1x4x1024xf32>
    %112 = vector.shape_cast %111 : vector<1x4x1024xf32> to vector<4x1024xf32>
    %c0_84 = arith.constant 0 : index
    %c0_85 = arith.constant 0 : index
    %c0_86 = arith.constant 0 : index
    %113 = vector.load %arg3[%c0_84, %c0_85, %c0_86] : memref<9x8x4xf32, #tpu.memory_space<vmem>>, vector<1x8x4xf32>
    %114 = vector.shape_cast %113 : vector<1x8x4xf32> to vector<8x4xf32>
    %cst_87 = arith.constant dense<0.000000e+00> : vector<8x1024xf32>
    %115 = tpu.matmul %114, %108, %cst_87 {dimension_numbers = #tpu.dot_dimension_numbers<[1], [0], [0], [1], [0, 0, 1, 1], [], []>} : vector<8x4xf32>, vector<4x1024xf32>, vector<8x1024xf32> -> vector<8x1024xf32>
    %116 = arith.addf %105, %115 : vector<8x1024xf32>
    %c1_88 = arith.constant 1 : index
    %c0_89 = arith.constant 0 : index
    %c0_90 = arith.constant 0 : index
    %117 = vector.load %arg3[%c1_88, %c0_89, %c0_90] : memref<9x8x4xf32, #tpu.memory_space<vmem>>, vector<1x8x4xf32>
    %118 = vector.shape_cast %117 : vector<1x8x4xf32> to vector<8x4xf32>
    %cst_91 = arith.constant dense<0.000000e+00> : vector<8x1024xf32>
    %119 = tpu.matmul %118, %110, %cst_91 {dimension_numbers = #tpu.dot_dimension_numbers<[1], [0], [0], [1], [0, 0, 1, 1], [], []>} : vector<8x4xf32>, vector<4x1024xf32>, vector<8x1024xf32> -> vector<8x1024xf32>
    %120 = arith.addf %116, %119 : vector<8x1024xf32>
    %c2_92 = arith.constant 2 : index
    %c0_93 = arith.constant 0 : index
    %c0_94 = arith.constant 0 : index
    %121 = vector.load %arg3[%c2_92, %c0_93, %c0_94] : memref<9x8x4xf32, #tpu.memory_space<vmem>>, vector<1x8x4xf32>
    %122 = vector.shape_cast %121 : vector<1x8x4xf32> to vector<8x4xf32>
    %cst_95 = arith.constant dense<0.000000e+00> : vector<8x1024xf32>
    %123 = tpu.matmul %122, %112, %cst_95 {dimension_numbers = #tpu.dot_dimension_numbers<[1], [0], [0], [1], [0, 0, 1, 1], [], []>} : vector<8x4xf32>, vector<4x1024xf32>, vector<8x1024xf32> -> vector<8x1024xf32>
    %124 = arith.addf %120, %123 : vector<8x1024xf32>
    %125 = arith.index_cast %9 : i32 to index
    %c0_96 = arith.constant 0 : index
    %c1152 = arith.constant 1152 : index
    %126 = vector.load %arg5[%125, %c0_96, %c1152] : memref<2x4x2432xf32, #tpu.memory_space<vmem>>, vector<1x4x1024xf32>
    %127 = vector.shape_cast %126 : vector<1x4x1024xf32> to vector<4x1024xf32>
    %c0_97 = arith.constant 0 : index
    %c0_98 = arith.constant 0 : index
    %c1152_99 = arith.constant 1152 : index
    %128 = vector.load %arg6[%c0_97, %c0_98, %c1152_99] : memref<2x4x2304xf32, #tpu.memory_space<vmem>>, vector<1x4x1024xf32>
    %129 = vector.shape_cast %128 : vector<1x4x1024xf32> to vector<4x1024xf32>
    %c1_100 = arith.constant 1 : index
    %c0_101 = arith.constant 0 : index
    %c1152_102 = arith.constant 1152 : index
    %130 = vector.load %arg6[%c1_100, %c0_101, %c1152_102] : memref<2x4x2304xf32, #tpu.memory_space<vmem>>, vector<1x4x1024xf32>
    %131 = vector.shape_cast %130 : vector<1x4x1024xf32> to vector<4x1024xf32>
    %c3_103 = arith.constant 3 : index
    %c0_104 = arith.constant 0 : index
    %c0_105 = arith.constant 0 : index
    %132 = vector.load %arg3[%c3_103, %c0_104, %c0_105] : memref<9x8x4xf32, #tpu.memory_space<vmem>>, vector<1x8x4xf32>
    %133 = vector.shape_cast %132 : vector<1x8x4xf32> to vector<8x4xf32>
    %cst_106 = arith.constant dense<0.000000e+00> : vector<8x1024xf32>
    %134 = tpu.matmul %133, %127, %cst_106 {dimension_numbers = #tpu.dot_dimension_numbers<[1], [0], [0], [1], [0, 0, 1, 1], [], []>} : vector<8x4xf32>, vector<4x1024xf32>, vector<8x1024xf32> -> vector<8x1024xf32>
    %135 = arith.addf %124, %134 : vector<8x1024xf32>
    %c4_107 = arith.constant 4 : index
    %c0_108 = arith.constant 0 : index
    %c0_109 = arith.constant 0 : index
    %136 = vector.load %arg3[%c4_107, %c0_108, %c0_109] : memref<9x8x4xf32, #tpu.memory_space<vmem>>, vector<1x8x4xf32>
    %137 = vector.shape_cast %136 : vector<1x8x4xf32> to vector<8x4xf32>
    %cst_110 = arith.constant dense<0.000000e+00> : vector<8x1024xf32>
    %138 = tpu.matmul %137, %129, %cst_110 {dimension_numbers = #tpu.dot_dimension_numbers<[1], [0], [0], [1], [0, 0, 1, 1], [], []>} : vector<8x4xf32>, vector<4x1024xf32>, vector<8x1024xf32> -> vector<8x1024xf32>
    %139 = arith.addf %135, %138 : vector<8x1024xf32>
    %c5_111 = arith.constant 5 : index
    %c0_112 = arith.constant 0 : index
    %c0_113 = arith.constant 0 : index
    %140 = vector.load %arg3[%c5_111, %c0_112, %c0_113] : memref<9x8x4xf32, #tpu.memory_space<vmem>>, vector<1x8x4xf32>
    %141 = vector.shape_cast %140 : vector<1x8x4xf32> to vector<8x4xf32>
    %cst_114 = arith.constant dense<0.000000e+00> : vector<8x1024xf32>
    %142 = tpu.matmul %141, %131, %cst_114 {dimension_numbers = #tpu.dot_dimension_numbers<[1], [0], [0], [1], [0, 0, 1, 1], [], []>} : vector<8x4xf32>, vector<4x1024xf32>, vector<8x1024xf32> -> vector<8x1024xf32>
    %143 = arith.addf %139, %142 : vector<8x1024xf32>
    %144 = arith.index_cast %9 : i32 to index
    %c0_115 = arith.constant 0 : index
    %c1280 = arith.constant 1280 : index
    %145 = vector.load %arg5[%144, %c0_115, %c1280] : memref<2x4x2432xf32, #tpu.memory_space<vmem>>, vector<1x4x1024xf32>
    %146 = vector.shape_cast %145 : vector<1x4x1024xf32> to vector<4x1024xf32>
    %c0_116 = arith.constant 0 : index
    %c0_117 = arith.constant 0 : index
    %c1280_118 = arith.constant 1280 : index
    %147 = vector.load %arg6[%c0_116, %c0_117, %c1280_118] : memref<2x4x2304xf32, #tpu.memory_space<vmem>>, vector<1x4x1024xf32>
    %148 = vector.shape_cast %147 : vector<1x4x1024xf32> to vector<4x1024xf32>
    %c1_119 = arith.constant 1 : index
    %c0_120 = arith.constant 0 : index
    %c1280_121 = arith.constant 1280 : index
    %149 = vector.load %arg6[%c1_119, %c0_120, %c1280_121] : memref<2x4x2304xf32, #tpu.memory_space<vmem>>, vector<1x4x1024xf32>
    %150 = vector.shape_cast %149 : vector<1x4x1024xf32> to vector<4x1024xf32>
    %c6_122 = arith.constant 6 : index
    %c0_123 = arith.constant 0 : index
    %c0_124 = arith.constant 0 : index
    %151 = vector.load %arg3[%c6_122, %c0_123, %c0_124] : memref<9x8x4xf32, #tpu.memory_space<vmem>>, vector<1x8x4xf32>
    %152 = vector.shape_cast %151 : vector<1x8x4xf32> to vector<8x4xf32>
    %cst_125 = arith.constant dense<0.000000e+00> : vector<8x1024xf32>
    %153 = tpu.matmul %152, %146, %cst_125 {dimension_numbers = #tpu.dot_dimension_numbers<[1], [0], [0], [1], [0, 0, 1, 1], [], []>} : vector<8x4xf32>, vector<4x1024xf32>, vector<8x1024xf32> -> vector<8x1024xf32>
    %154 = arith.addf %143, %153 : vector<8x1024xf32>
    %c7_126 = arith.constant 7 : index
    %c0_127 = arith.constant 0 : index
    %c0_128 = arith.constant 0 : index
    %155 = vector.load %arg3[%c7_126, %c0_127, %c0_128] : memref<9x8x4xf32, #tpu.memory_space<vmem>>, vector<1x8x4xf32>
    %156 = vector.shape_cast %155 : vector<1x8x4xf32> to vector<8x4xf32>
    %cst_129 = arith.constant dense<0.000000e+00> : vector<8x1024xf32>
    %157 = tpu.matmul %156, %148, %cst_129 {dimension_numbers = #tpu.dot_dimension_numbers<[1], [0], [0], [1], [0, 0, 1, 1], [], []>} : vector<8x4xf32>, vector<4x1024xf32>, vector<8x1024xf32> -> vector<8x1024xf32>
    %158 = arith.addf %154, %157 : vector<8x1024xf32>
    %c8_130 = arith.constant 8 : index
    %c0_131 = arith.constant 0 : index
    %c0_132 = arith.constant 0 : index
    %159 = vector.load %arg3[%c8_130, %c0_131, %c0_132] : memref<9x8x4xf32, #tpu.memory_space<vmem>>, vector<1x8x4xf32>
    %160 = vector.shape_cast %159 : vector<1x8x4xf32> to vector<8x4xf32>
    %cst_133 = arith.constant dense<0.000000e+00> : vector<8x1024xf32>
    %161 = tpu.matmul %160, %150, %cst_133 {dimension_numbers = #tpu.dot_dimension_numbers<[1], [0], [0], [1], [0, 0, 1, 1], [], []>} : vector<8x4xf32>, vector<4x1024xf32>, vector<8x1024xf32> -> vector<8x1024xf32>
    %162 = arith.addf %158, %161 : vector<8x1024xf32>
    %cst_134 = arith.constant 0.000000e+00 : f32
    %163 = vector.broadcast %cst_134 : f32 to vector<8x1024xf32>
    %164 = arith.minimumf %162, %163 : vector<8x1024xf32>
    %165 = math.exp %164 : vector<8x1024xf32>
    %cst_135 = arith.constant 1.000000e+00 : f32
    %166 = vector.broadcast %cst_135 : f32 to vector<8x1024xf32>
    %167 = arith.subf %165, %166 : vector<8x1024xf32>
    %cst_136 = arith.constant 0.000000e+00 : f32
    %168 = vector.broadcast %cst_136 : f32 to vector<8x1024xf32>
    %169 = arith.cmpf ogt, %162, %168 : vector<8x1024xf32>
    %170 = arith.select %169, %162, %167 : vector<8x1024xi1>, vector<8x1024xf32>
    %c0_137 = arith.constant 0 : index
    %c0_138 = arith.constant 0 : index
    %c1024_139 = arith.constant 1024 : index
    %171 = vector.load %arg4[%c0_137, %c0_138, %c1024_139] : memref<1x8x2048xf32, #tpu.memory_space<vmem>>, vector<1x8x1024xf32>
    %172 = vector.shape_cast %171 : vector<1x8x1024xf32> to vector<8x1024xf32>
    %173 = vector.shape_cast %170 : vector<8x1024xf32> to vector<1x8x1024xf32>
    tpu.vector_store %arg4[%c0_137, %c0_138, %c1024_139], %173 {strides = array<i32>} : memref<1x8x2048xf32, #tpu.memory_space<vmem>>, vector<1x8x1024xf32>,
    return
  }
  func.func @transform_1(%arg0: i32, %arg1: i32) -> (i32, i32, i32) {
    %c0_i32 = arith.constant 0 : i32
    %c0_i32_0 = arith.constant 0 : i32
    %c0_i32_1 = arith.constant 0 : i32
    %c0_i32_2 = arith.constant 0 : i32
    return %c0_i32, %c0_i32_0, %c0_i32_1 : i32, i32, i32
  }
  func.func @transform_2(%arg0: i32, %arg1: i32) -> (i32, i32, i32) {
    %c0_i32 = arith.constant 0 : i32
    %c0_i32_0 = arith.constant 0 : i32
    return %arg0, %c0_i32, %arg1 : i32, i32, i32
  }
}

</mosaic_0001>

<bundles_post_ra>
// kernel: upconv_forward.1
= control target key start
LH: loop header
LB: loop body
LE: loop exit
PB: predicated region body
PF: predicated region fallthrough
CT: control target
= control target key end

     0   :  { %s7106_s9 = smov 0   ;;  %s7108_s10 = smov 0   ;;  %s7947_s0 = inlined_call_operand.vmem [shape: f32[2,4,4480], index: 0, kind: input, shape index: {}]   ;;  %s7948_s1 = inlined_call_operand.vmem [shape: f32[9,8,4], index: 1, kind: input, shape index: {}]   ;;  %s7949_s2 = inlined_call_operand.vmem [shape: f32[2,8,4096], index: 2, kind: output, shape index: {}]  }
   0x1   :  { %s7110_s11 = smov 0   ;;  %s7112_s12 = smov 0  }
   0x2   :  { %s7114_s13 = smov 0  }
   0x3 LB: > { %s21_s14 = sadd.s32 1, %s7078_s11  ;;  %s24_s15 = sadd.s32 1, %s7082_s12  ;;  %s7086_s13 = sphi %s7114_s13, %s12_s13   ;;  %s7082_s12 = sphi %s7112_s12, %s7953_s12   ;;  %s7078_s11 = sphi %s7110_s11, %s7952_s11   ;;  %s7074_s10 = sphi %s7108_s10, %s7951_s10   ;;  %s7070_s9 = sphi %s7106_s9, %s7950_s9  }
   0x4   : > { %p22_p0 = scmp.ge.s32.totalorder %s21_s14, 2  ;;  %p6536_p1 = scmp.ge.s32.totalorder %s7086_s13, 1 }
   0x5   : > { %p92_p2 = scmp.lt.s32.totalorder %s7086_s13, 5 }
   0x6   : > { %s7955_s14 = smov (%p22_p0, %s21_s14), 0  ;;  %s7957_s15 = smov (!%p22_p0, %s24_s15), %s7082_s12 }
   0x7   : > { %p93_p3 = pnand %p6536_p1, %p92_p2  ;;  %p26_p4 = scmp.ge.s32.totalorder %s7957_s15, 2 }
   0x8   : > { %s6537_s16 = sshll.u32 (!%p93_p3), %s7070_s9, 4  ;;  %p112_p5 = scmp.lt.s32.totalorder (!%p93_p3), %s7074_s10, 1 }
   0x9   : > { %s7959_s15 = smov (%p26_p4, %s7957_s15), 0  ;;  %96 = sbr.rel (%p93_p3) target bundleno = 564 (0x234), region = 24 }
   0xa   : > { %p114_p6 = scmp.lt.s32.totalorder (!%p93_p3), %s6537_s16, 31  ;;  %p121_p7 = scmp.lt.s32.totalorder (!%p93_p3), %s7070_s9, 0 }
   0xb   : > { %s122_s19 = ssub.s32 (!%p93_p3), 0, %s7070_s9  ;;  %p6543_p9 = scmp.ne.s32.totalorder (!%p93_p3), %s7070_s9, 0 }
   0xc   : > { %s6540_s21 = smin.u32 (!%p93_p3), %s7070_s9, %s122_s19 }
   0xd   : > { %s124_s23 = sand.u32 (!%p93_p3), 1, %s6540_s21  }
   0xe   : > { %s125_s27 = ssub.s32 (!%p93_p3), 0, %s124_s23 }
  0x10   : > { %s113_s17 = scalar_select %p112_p5, %s7074_s10, 1 }
  0x11   : > { %s7961_s16 = smov (!%p114_p6, %s6537_s16), 31  ;;  %s7963_s27 = smov (!%p121_p7, %s125_s27), %s124_s23 }
  0x12   : > { %s6538_s18 = sshll.u32 %s113_s17, 5  ;;  %p6542_p8 = scmp.lt.s32.totalorder %s7963_s27, 0 }
  0x13   : > { %s117_s20 = sadd.s32 %s6538_s18, %s7961_s16  ;;  %s131_s28 = sadd.s32 2, %s7963_s27 }
  0x14   : > { %s6539_s22 = sshll.u32 %s117_s20, 3  ;;  %s7965_s28 = smov (!%p6542_p8, %s131_s28), %s7963_s27 }
  0x15   : > { %s7149_s26 = scalar_lea.vmem %s7949_s2, %s6539_s22  ;;  %136 = sbr.rel (%p6543_p9) target bundleno = 34 (0x22), region = 28 }
  0x16   : > { %s6544_s29 = sshll.u32 (!%p6543_p9), %s7070_s9, 11  ;;  %s140_s30 = smul.u32 (!%p6543_p9), 35, %s7074_s10 }
  0x17   : > { %s138_s3 = sshra.s32 (!%p6543_p9), %s6544_s29, 7 }
  0x18   : > { %s141_s4 = sadd.s32 (!%p6543_p9), %s140_s30, %s138_s3 }
  0x19   : > { %s6545_s5 = sshll.u32 (!%p6543_p9), %s141_s4, 2 }
  0x1a   : > { %s143_s8 = scalar_lea.vmem (!%p6543_p9), %s7947_s0, %s6545_s5 }
  0x1b   : > { %v181_v0 = vld [vmem:[%s143_s8] sm:$0xff] (!%p6543_p9)  ;;  %v183_v1 = vld [vmem:[%s143_s8 + $0x8] sm:$0xff] (!%p6543_p9)  ;;  %v185_v2 = vld [vmem:[%s143_s8 + $0x10] sm:$0xff] (!%p6543_p9) }
  0x1c   : > { %182 = vst [vmem:[#allocation2] sm:$0xff] %v181_v0  ;;  %184 = vst [vmem:[#allocation2 + $0x8] sm:$0xff] %v183_v1  ;;  %v187_v3 = vld [vmem:[%s143_s8 + $0x18] sm:$0xff]  ;;  %v189_v4 = vld [vmem:[%s143_s8 + $0x20] sm:$0xff] }
  0x1d   : > { %186 = vst [vmem:[#allocation2 + $0x10] sm:$0xff] %v185_v2  ;;  %v191_v5 = vld [vmem:[%s143_s8 + $0x28] sm:$0xff]  ;;  %188 = vst [vmem:[#allocation2 + $0x18] sm:$0xff] %v187_v3  ;;  %v193_v6 = vld [vmem:[%s143_s8 + $0x30] sm:$0xff] }
  0x1e   : > { %190 = vst [vmem:[#allocation2 + $0x20] sm:$0xff] %v189_v4  ;;  %192 = vst [vmem:[#allocation2 + $0x28] sm:$0xff] %v191_v5  ;;  %v195_v7 = vld [vmem:[%s143_s8 + $0x38] sm:$0xff]  ;;  %v197_v8 = vld [vmem:[%s143_s8 + $0x40] sm:$0xff] }
  0x1f   : > { %194 = vst [vmem:[#allocation2 + $0x30] sm:$0xff] %v193_v6  ;;  %196 = vst [vmem:[#allocation2 + $0x38] sm:$0xff] %v195_v7  ;;  %v6546_v9 = vld [vmem:[%s143_s8 + $0x48] sm:$0xf] }
  0x20   : > { %198 = vst [vmem:[#allocation2 + $0x40] sm:$0xff] %v197_v8  ;;  %209 = vst [vmem:[#allocation2 + $0x48] sm:$0xf] %v6546_v9 }
  0x21   : > { %213 = vsyncadd [#allocation4], 1216 }
  0x22 PF: > { %s6806_s16 = smul.u32 76, %s7965_s28  ;;  %s217_s18 = scalar_lea.sflag [#allocation4], %s7965_s28 }
  0x24   : > { %s7160_s17 = scalar_lea.vmem [#allocation2], %s6806_s16 }
  0x25   : > { %7066 = dma.done.wait %s217_s18, 1216 }
  0x26   : > { %7067 = vsyncadd %s217_s18, 4294966080  ;;  %s222_s19 = sadd.s32 1, %s7070_s9 }
  0x27   : > { %p6548_p10 = scmp.ge.s32.totalorder %s222_s19, 2 }
  0x28   : > { %s227_s20 = ssub.s32 (!%p6548_p10), 1, %s7965_s28  ;;  %s6807_s21 = sshll.u32 (!%p6548_p10), %s7070_s9, 11 }
  0x29   : > { %226 = sbr.rel (%p6548_p10) target bundleno = 54 (0x36), region = 69  ;;  %s6808_s22 = sadd.s32 (!%p6548_p10), 2048, %s6807_s21 }
  0x2a   : > { %s231_s23 = smul.u32 (!%p6548_p10), 35, %s7074_s10  ;;  %s229_s24 = sshra.s32 (!%p6548_p10), %s6808_s22, 7 }
  0x2b   : > { %s6809_s25 = smul.u32 (!%p6548_p10), 76, %s227_s20  ;;  %s238_s9 = scalar_lea.sflag (!%p6548_p10), [#allocation4], %s227_s20 }
  0x2c   : > { %s232_s27 = sadd.s32 (!%p6548_p10), %s231_s23, %s229_s24 }
  0x2d   : > { %s6550_s29 = sshll.u32 (!%p6548_p10), %s232_s27, 2  ;;  %s237_s5 = scalar_lea.vmem (!%p6548_p10), [#allocation2], %s6809_s25 }
  0x2e   : > { %s234_s4 = scalar_lea.vmem (!%p6548_p10), %s7947_s0, %s6550_s29 }
  0x2f   : > { %v276_v10 = vld [vmem:[%s234_s4] sm:$0xff] (!%p6548_p10)  ;;  %v278_v11 = vld [vmem:[%s234_s4 + $0x8] sm:$0xff] (!%p6548_p10)  ;;  %v280_v12 = vld [vmem:[%s234_s4 + $0x10] sm:$0xff] (!%p6548_p10) }
  0x30   : > { %277 = vst [vmem:[%s237_s5] sm:$0xff] %v276_v10  ;;  %279 = vst [vmem:[%s237_s5 + $0x8] sm:$0xff] %v278_v11  ;;  %v282_v13 = vld [vmem:[%s234_s4 + $0x18] sm:$0xff]  ;;  %v284_v14 = vld [vmem:[%s234_s4 + $0x20] sm:$0xff] }
  0x31   : > { %281 = vst [vmem:[%s237_s5 + $0x10] sm:$0xff] %v280_v12  ;;  %v286_v15 = vld [vmem:[%s234_s4 + $0x28] sm:$0xff]  ;;  %283 = vst [vmem:[%s237_s5 + $0x18] sm:$0xff] %v282_v13  ;;  %v288_v16 = vld [vmem:[%s234_s4 + $0x30] sm:$0xff] }
  0x32   : > { %285 = vst [vmem:[%s237_s5 + $0x20] sm:$0xff] %v284_v14  ;;  %287 = vst [vmem:[%s237_s5 + $0x28] sm:$0xff] %v286_v15  ;;  %v290_v17 = vld [vmem:[%s234_s4 + $0x38] sm:$0xff]  ;;  %v292_v18 = vld [vmem:[%s234_s4 + $0x40] sm:$0xff] }
  0x33   : > { %289 = vst [vmem:[%s237_s5 + $0x30] sm:$0xff] %v288_v16  ;;  %291 = vst [vmem:[%s237_s5 + $0x38] sm:$0xff] %v290_v17  ;;  %v6552_v19 = vld [vmem:[%s234_s4 + $0x48] sm:$0xf] }
  0x34   : > { %293 = vst [vmem:[%s237_s5 + $0x40] sm:$0xff] %v292_v18  ;;  %6553 = vst [vmem:[%s237_s5 + $0x48] sm:$0xf] %v6552_v19 }
  0x35   : > { %308 = vsyncadd %s238_s9, 1216 }
  0x36 PF: > { %s7088_s10 = smov 127   ;;  %v7089_v24 = vmov 0.0   ;;  %s7090_s28 = smov 126   ;;  %vm359_vm0 = vcmask 1043456   ;;  %vm361_vm1 = vcmask 1039360   ;;  %v7255_v51 = vld [vmem:[%s7948_s1 + $0x8] sm:$0xff] }
  0x37   : > { %592 = vmatprep.mubr.f32.mxu0 %v7089_v24  ;;  %663 = vmatprep.mubr.f32.mxu1 %v7089_v24  ;;  %vm508_vm2 = vcmask 31744   ;;  %vm448_vm3 = vcmask 1031168   ;;  %v7319_v8 = vld [vmem:[%s7948_s1] sm:$0xff] }
  0x3d   : > { %v7175_v20 = vld [vmem:[%s7160_s17 + $0x10] sm:$0xff]  ;;  %v7178_v21 = vld [vmem:[%s7160_s17] sm:$0xff]  ;;  %v7185_v22 = vld [vmem:[%s7160_s17 + $0x18] sm:$0xff] }
  0x3e   : > { %333 = vrot.lane.b32.xlu1 %v7175_v20, %s7088_s10  ;;  %329 = vrot.lane.b32.xlu0 %v7178_v21, %s7088_s10  ;;  %v7188_v23 = vld [vmem:[%s7160_s17 + $0x8] sm:$0xff]  ;;  %v7197_v25 = vld [vmem:[%s7160_s17 + $0x20] sm:$0xff]  ;;  %v816_v61 = vcombine.high %v7178_v21, %v7178_v21  ;;  %v7311_v7 = vcombine.high %v7175_v20, %v7175_v20  ;;  %v7328_v11 = vcombine.high %v7185_v22, %v7185_v22 }
  0x3f   : > { %v7207_v26 = vld [vmem:[%s7160_s17 + $0x28] sm:$0xff]  ;;  %v7213_v27 = vld [vmem:[%s7160_s17 + $0x38] sm:$0xff]  ;;  %v7216_v28 = vld [vmem:[%s7160_s17 + $0x30] sm:$0xff]  ;;  %v7289_v62 = vcombine.high %v7188_v23, %v7188_v23 }
  0x40   : > { %v7223_v29 = vld [vmem:[%s7160_s17 + $0x40] sm:$0xff]  ;;  %v318_v30 = vld [vmem:[%s7160_s17 + $0x48] sm:$0xf] }
  0x41   : > { %v406_v31 = vld [vmem:[%s7160_s17 + $0x48] sm:$0xf] }
  0x42   : > { %335 = vrot.lane.b32.xlu1 %v7185_v22, %s7088_s10  ;;  %331 = vrot.lane.b32.xlu0 %v7188_v23, %s7088_s10 }
  0x46   : > { %417 = vrot.lane.b32.xlu1 %v7178_v21, %s7090_s28  ;;  %337 = vrot.lane.b32.xlu0 %v7197_v25, %s7088_s10 }
  0x4a   : > { %421 = vrot.lane.b32.xlu1 %v7175_v20, %s7090_s28  ;;  %419 = vrot.lane.b32.xlu0 %v7188_v23, %s7090_s28 }
  0x4e   : > { %425 = vrot.lane.b32.xlu1 %v7197_v25, %s7090_s28  ;;  %423 = vrot.lane.b32.xlu0 %v7185_v22, %s7090_s28 }
  0x52   : > { %427 = vrot.lane.b32.xlu1 %v7207_v26, %s7090_s28  ;;  %339 = vrot.lane.b32.xlu0 %v7207_v26, %s7088_s10 }
  0x56   : > { %343 = vrot.lane.b32.xlu1 %v7213_v27, %s7088_s10  ;;  %341 = vrot.lane.b32.xlu0 %v7216_v28, %s7088_s10 }
  0x5a   : > { %429 = vrot.lane.b32.xlu1 %v7216_v28, %s7090_s28  ;;  %345 = vrot.lane.b32.xlu0 %v7223_v29, %s7088_s10 }
  0x5e   : > { %431 = vrot.lane.b32.xlu0 %v7213_v27, %s7090_s28  ;;  %433 = vrot.lane.b32.xlu1 %v7223_v29, %s7090_s28 }
  0x62   : > { %347 = vrot.lane.b32.xlu0 %v318_v30, %s7088_s10  ;;  %435 = vrot.lane.b32.xlu1 %v406_v31, %s7090_s28 }
  0xb0   : > { %v334_v32 = vpop.permute.xlu1 %333  ;;  %v330_v33 = vpop.permute.xlu0 %329 }
  0xb1   : > { %v351_v34 = vrot.slane %v334_v32, 4  ;;  %v349_v37 = vrot.slane %v330_v33, 4 }
  0xb4   : > { %v336_v35 = vpop.permute.xlu1 %335  ;;  %v332_v36 = vpop.permute.xlu0 %331 }
  0xb5   : > { %v352_v38 = vrot.slane %v336_v35, 4  ;;  %v350_v39 = vrot.slane %v332_v36, 4 }
  0xb7   : > { %v365_v40 = vsel %vm359_vm0, %v351_v34, %v352_v38  ;;  %v360_v41 = vsel %vm359_vm0, %v349_v37, %v350_v39  ;;  %v363_v42 = vsel %vm359_vm0, %v350_v39, %v351_v34  ;;  %v1444_v39 = vld [vmem:[%s7160_s17 + $0x4] sm:$0xff] }
  0xb8   : > { %v7237_v43 = vsel %vm361_vm1, %v334_v32, %v365_v40  ;;  %v362_v44 = vsel %vm361_vm1, %v330_v33, %v360_v41  ;;  %v7241_v45 = vsel %vm361_vm1, %v332_v36, %v363_v42  ;;  %v418_v46 = vpop.permute.xlu1 %417  ;;  %v7243_v47 = vpop.permute.xlu0 %337  ;;  %v1445_v40 = vld [vmem:[%s7160_s17 + $0xc] sm:$0xff] }
  0xb9   : > { %390 = vst [vmem:[#allocation3 + $0x10] sm:$0xff] %v7237_v43  ;;  %388 = vst [vmem:[#allocation3] sm:$0xff] %v362_v44  ;;  %v353_v48 = vrot.slane %v7243_v47, 4  ;;  %v504_v49 = vcombine.high %v362_v44, %v362_v44  ;;  %v7250_v50 = vcombine.high %v7241_v45, %v7241_v45  ;;  %v437_v52 = vrot.slane %v418_v46, 4 }
  0xba   : > { %389 = vst [vmem:[#allocation3 + $0x8] sm:$0xff] %v7241_v45  ;;  %v7271_v57 = vcombine.high %v7237_v43, %v7237_v43 }
  0xbb   : > { %v367_v53 = vsel %vm359_vm0, %v352_v38, %v353_v48  ;;  %6555 = vmatprep.subr.msk.mxu0 %vm359_vm0, %v504_v49  ;;  %6558 = vmatprep.subr.msk.mxu1 %vm359_vm0, %v7250_v50 }
  0xbc   : > { %v7264_v54 = vsel %vm361_vm1, %v336_v35, %v367_v53  ;;  %v422_v55 = vpop.permute.xlu1 %421  ;;  %v420_v56 = vpop.permute.xlu0 %419  ;;  %6556 = vmatpush1.msk.msra.mxu0 %vm359_vm0, %v362_v44  ;;  %6559 = vmatpush1.msk.msra.mxu1 %vm359_vm0, %v7241_v45  ;;  %v7400_v44 = vld [vmem:[%s7948_s1 + $0x10] sm:$0xff] }
  0xbd   : > { %391 = vst [vmem:[#allocation3 + $0x18] sm:$0xff] %v7264_v54  ;;  %v439_v58 = vrot.slane %v422_v55, 4  ;;  %v438_v59 = vrot.slane %v420_v56, 4  ;;  %6557 = vmatmul.mubr.msk.f32.vlgmr.msra.gmra.mrb[0].mxu0 %vm508_vm2, %v7255_v51  ;;  %6560 = vmatmul.mubr.msk.f32.vlgmr.msra.gmra.mrb[0].mxu1 %vm508_vm2, %v7255_v51  ;;  %v7280_v60 = vcombine.high %v7264_v54, %v7264_v54 }
  0xbe   : > { %6561 = vmatprep.subr.msk.mxu0 %vm359_vm0, %v7271_v57  ;;  %734 = vmatprep.mubr.f32.mxu0 %v7089_v24 }
  0xbf   : > { %v447_v63 = vsel %vm359_vm0, %v437_v52, %v438_v59  ;;  %v450_v0 = vsel %vm359_vm0, %v438_v59, %v439_v58  ;;  %6562 = vmatpush1.msk.msra.mxu0 %vm359_vm0, %v7237_v43  ;;  %6564 = vmatprep.subr.msk.mxu1 %vm359_vm0, %v7280_v60  ;;  %v1447_v59 = vld [vmem:[%s7160_s17 + $0x1c] sm:$0xff] }
  0xc0   : > { %v449_v1 = vsel %vm448_vm3, %v418_v46, %v447_v63  ;;  %v7299_v2 = vsel %vm448_vm3, %v420_v56, %v450_v0  ;;  %v426_v3 = vpop.permute.xlu1 %425  ;;  %v424_v4 = vpop.permute.xlu0 %423  ;;  %6565 = vmatpush1.msk.msra.mxu1 %vm359_vm0, %v7264_v54  ;;  %805 = vmatprep.mubr.f32.mxu1 %v7089_v24  ;;  %v1463_v56 = vcombine.high %v1445_v40, %v1445_v40 }
  0xc1   : > { %476 = vst [vmem:[#allocation3 + $0x48] sm:$0xff] %v449_v1  ;;  %477 = vst [vmem:[#allocation3 + $0x50] sm:$0xff] %v7299_v2  ;;  %v441_v5 = vrot.slane %v426_v3, 4  ;;  %v440_v6 = vrot.slane %v424_v4, 4  ;;  %6563 = vmatmul.mubr.msk.f32.vlgmr.msra.gmra.mrb[2].mxu0 %vm508_vm2, %v7255_v51  ;;  %6566 = vmatmul.mubr.msk.f32.vlgmr.msra.gmra.mrb[2].mxu1 %vm508_vm2, %v7255_v51  ;;  %v1129_v18 = vcombine.high %v449_v1, %v449_v1 }
  0xc2   : > { %6567 = vmatprep.subr.msk.mxu0 %vm359_vm0, %v816_v61  ;;  %6570 = vmatprep.subr.msk.mxu1 %vm359_vm0, %v7289_v62  ;;  %v7350_v19 = vcombine.high %v7299_v2, %v7299_v2 }
  0xc3   : > { %v452_v9 = vsel %vm359_vm0, %v439_v58, %v440_v6  ;;  %v454_v10 = vsel %vm359_vm0, %v440_v6, %v441_v5  ;;  %6568 = vmatpush1.msk.msra.mxu0 %vm359_vm0, %v7178_v21  ;;  %903 = vmatprep.mubr.f32.mxu0 %v7089_v24  ;;  %v1446_v58 = vld [vmem:[%s7160_s17 + $0x14] sm:$0xff]  ;;  %v1465_v6 = vcombine.high %v1447_v59, %v1447_v59 }
  0xc4   : > { %v7331_v12 = vsel %vm448_vm3, %v422_v55, %v452_v9  ;;  %v7334_v13 = vsel %vm448_vm3, %v424_v4, %v454_v10  ;;  %v7336_v14 = vpop.permute.xlu1 %427  ;;  %v340_v15 = vpop.permute.xlu0 %339  ;;  %6571 = vmatpush1.msk.msra.mxu1 %vm359_vm0, %v7188_v23  ;;  %974 = vmatprep.mubr.f32.mxu1 %v7089_v24  ;;  %v1462_v55 = vcombine.high %v1444_v39, %v1444_v39 }
  0xc5   : > { %478 = vst [vmem:[#allocation3 + $0x58] sm:$0xff] %v7331_v12  ;;  %479 = vst [vmem:[#allocation3 + $0x60] sm:$0xff] %v7334_v13  ;;  %v442_v16 = vrot.slane %v7336_v14, 4  ;;  %v354_v17 = vrot.slane %v340_v15, 4  ;;  %6573 = vmatprep.subr.msk.mxu0 %vm359_vm0, %v7311_v7  ;;  %6569 = vmatmul.mubr.msk.f32.vlgmr.msra.gmra.mrb[0].mxu0 %vm508_vm2, %v7319_v8  ;;  %v7380_v37 = vcombine.high %v7334_v13, %v7334_v13 }
  0xc6   : > { %6572 = vmatmul.mubr.msk.f32.vlgmr.msra.gmra.mrb[0].mxu1 %vm508_vm2, %v7319_v8  ;;  %6574 = vmatpush1.msk.msra.mxu0 %vm359_vm0, %v7175_v20  ;;  %v7388_v38 = vcombine.high %v7331_v12, %v7331_v12 }
  0xc7   : > { %v456_v21 = vsel %vm359_vm0, %v441_v5, %v442_v16  ;;  %v369_v30 = vsel %vm359_vm0, %v353_v48, %v354_v17  ;;  %6576 = vmatprep.subr.msk.mxu1 %vm359_vm0, %v7328_v11  ;;  %6580 = vmatprep.subr.msk.mxu0 %vm359_vm0, %v1129_v18  ;;  %v1464_v5 = vcombine.high %v1446_v58, %v1446_v58 }
  0xc8   : > { %v7364_v31 = vsel %vm448_vm3, %v426_v3, %v456_v21  ;;  %v7368_v32 = vsel %vm361_vm1, %v7243_v47, %v369_v30  ;;  %v344_v33 = vpop.permute.xlu1 %343  ;;  %v342_v34 = vpop.permute.xlu0 %341  ;;  %6577 = vmatpush1.msk.msra.mxu1 %vm359_vm0, %v7185_v22  ;;  %1045 = vmatprep.mubr.f32.mxu0 %v7089_v24 }
  0xc9   : > { %480 = vst [vmem:[#allocation3 + $0x68] sm:$0xff] %v7364_v31  ;;  %392 = vst [vmem:[#allocation3 + $0x20] sm:$0xff] %v7368_v32  ;;  %v356_v35 = vrot.slane %v344_v33, 4  ;;  %v355_v36 = vrot.slane %v342_v34, 4  ;;  %1116 = vmatprep.mubr.f32.mxu1 %v7089_v24  ;;  %6583 = vmatprep.subr.msk.mxu1 %vm359_vm0, %v7350_v19 }
  0xca   : > { %6575 = vmatmul.mubr.msk.f32.vlgmr.msra.gmra.mrb[2].mxu0 %vm508_vm2, %v7319_v8  ;;  %6578 = vmatmul.mubr.msk.f32.vlgmr.msra.gmra.mrb[2].mxu1 %vm508_vm2, %v7319_v8 }
  0xcb   : > { %v371_v41 = vsel %vm359_vm0, %v354_v17, %v355_v36  ;;  %v373_v42 = vsel %vm359_vm0, %v355_v36, %v356_v35  ;;  %6581 = vmatpush1.msk.msra.mxu0 %vm359_vm0, %v449_v1  ;;  %6584 = vmatpush1.msk.msra.mxu1 %vm359_vm0, %v7299_v2  ;;  %v1449_v17 = vld [vmem:[#allocation3 + $0xc] sm:$0xff] }
  0xcc   : > { %v7403_v46 = vsel %vm361_vm1, %v340_v15, %v371_v41  ;;  %v7406_v47 = vsel %vm361_vm1, %v342_v34, %v373_v42  ;;  %v430_v48 = vpop.permute.xlu1 %429  ;;  %6586 = vmatprep.subr.msk.mxu0 %vm359_vm0, %v7388_v38  ;;  %1216 = vmatprep.mubr.f32.mxu0 %v7089_v24  ;;  %v7411_v49 = vpop.permute.xlu0 %345  ;;  %v1450_v41 = vld [vmem:[#allocation3 + $0x14] sm:$0xff] }
  0xcd   : > { %393 = vst [vmem:[#allocation3 + $0x28] sm:$0xff] %v7403_v46  ;;  %394 = vst [vmem:[#allocation3 + $0x30] sm:$0xff] %v7406_v47  ;;  %v443_v52 = vrot.slane %v430_v48, 4  ;;  %1287 = vmatprep.mubr.f32.mxu1 %v7089_v24  ;;  %6589 = vmatprep.subr.msk.mxu1 %vm359_vm0, %v7380_v37  ;;  %v357_v53 = vrot.slane %v7411_v49, 4 }
  0xce   : > { %6582 = vmatmul.mubr.msk.f32.vlgmr.msra.gmra.mrb[0].mxu0 %vm508_vm2, %v7400_v44  ;;  %6585 = vmatmul.mubr.msk.f32.vlgmr.msra.gmra.mrb[0].mxu1 %vm508_vm2, %v7400_v44 }
  0xcf   : > { %v458_v61 = vsel %vm359_vm0, %v442_v16, %v443_v52  ;;  %6587 = vmatpush1.msk.msra.mxu0 %vm359_vm0, %v7331_v12  ;;  %6590 = vmatpush1.msk.msra.mxu1 %vm359_vm0, %v7334_v13  ;;  %v375_v63 = vsel %vm359_vm0, %v356_v35, %v357_v53  ;;  %v1448_v16 = vld [vmem:[#allocation3 + $0x4] sm:$0xff] }
  0xd0   : > { %v7433_v0 = vsel %vm448_vm3, %v7336_v14, %v458_v61  ;;  %1358 = vmatprep.mubr.f32.mxu0 %v7089_v24  ;;  %1429 = vmatprep.mubr.f32.mxu1 %v7089_v24  ;;  %v7438_v1 = vsel %vm361_vm1, %v344_v33, %v375_v63  ;;  %v432_v3 = vpop.permute.xlu0 %431  ;;  %v434_v4 = vpop.permute.xlu1 %433  ;;  %v7453_v14 = vld [vmem:[%s7948_s1 + $0x18] sm:$0xff]  ;;  %v1453_v61 = vld [vmem:[#allocation3 + $0x54] sm:$0xff] }
  0xd1   : > { %481 = vst [vmem:[#allocation3 + $0x70] sm:$0xff] %v7433_v0  ;;  %395 = vst [vmem:[#allocation3 + $0x38] sm:$0xff] %v7438_v1  ;;  %6593 = vmatprep.subr.msk.mxu0 %vm359_vm0, %v1462_v55  ;;  %6596 = vmatprep.subr.msk.mxu1 %vm359_vm0, %v1463_v56  ;;  %v444_v9 = vrot.slane %v432_v3, 4  ;;  %v445_v10 = vrot.slane %v434_v4, 4  ;;  %v1451_v42 = vld [vmem:[#allocation3 + $0x1c] sm:$0xff] }
  0xd2   : > { %6588 = vmatmul.mubr.msk.f32.vlgmr.msra.gmra.mrb[2].mxu0 %vm508_vm2, %v7400_v44  ;;  %6591 = vmatmul.mubr.msk.f32.vlgmr.msra.gmra.mrb[2].mxu1 %vm508_vm2, %v7400_v44 }
  0xd3   : > { %6594 = vmatpush1.msk.msra.mxu0 %vm359_vm0, %v1444_v39  ;;  %6597 = vmatpush1.msk.msra.mxu1 %vm359_vm0, %v1445_v40  ;;  %v460_v15 = vsel %vm359_vm0, %v443_v52, %v444_v9  ;;  %v462_v18 = vsel %vm359_vm0, %v444_v9, %v445_v10  ;;  %v1783_v39 = vcombine.high %v1448_v16, %v1448_v16 }
  0xd4   : > { %1549 = vmatprep.mubr.f32.mxu0 %v7089_v24  ;;  %1620 = vmatprep.mubr.f32.mxu1 %v7089_v24  ;;  %v7460_v21 = vsel %vm448_vm3, %v430_v48, %v460_v15  ;;  %v348_v30 = vpop.permute.xlu0 %347  ;;  %v7463_v33 = vsel %vm448_vm3, %v432_v3, %v462_v18  ;;  %v436_v34 = vpop.permute.xlu1 %435  ;;  %v1784_v40 = vcombine.high %v1449_v17, %v1449_v17 }
  0xd5   : > { %6599 = vmatprep.subr.msk.mxu0 %vm359_vm0, %v1464_v5  ;;  %6602 = vmatprep.subr.msk.mxu1 %vm359_vm0, %v1465_v6  ;;  %482 = vst [vmem:[#allocation3 + $0x78] sm:$0xff] %v7460_v21  ;;  %v358_v35 = vrot.slane %v348_v30, 4  ;;  %483 = vst [vmem:[#allocation3 + $0x80] sm:$0xff] %v7463_v33  ;;  %v446_v36 = vrot.slane %v436_v34, 4  ;;  %v2105_v3 = vcombine.high %v1453_v61, %v1453_v61  ;;  %v1455_v5 = vld [vmem:[#allocation3 + $0x64] sm:$0xff] }
  0xd6   : > { %6595 = vmatmul.mubr.msk.f32.vlgmr.msra.gmra.mrb[0].mxu0 %vm508_vm2, %v7453_v14  ;;  %6598 = vmatmul.mubr.msk.f32.vlgmr.msra.gmra.mrb[0].mxu1 %vm508_vm2, %v7453_v14  ;;  %v2107_v9 = vcombine.high %v1455_v5, %v1455_v5  ;;  %v7544_v15 = vcombine.high %v7197_v25, %v7197_v25 }
  0xd7   : > { %6600 = vmatpush1.msk.msra.mxu0 %vm359_vm0, %v1446_v58  ;;  %6603 = vmatpush1.msk.msra.mxu1 %vm359_vm0, %v1447_v59  ;;  %v377_v48 = vsel %vm359_vm0, %v357_v53, %v358_v35  ;;  %v464_v52 = vsel %vm359_vm0, %v445_v10, %v446_v36  ;;  %v1785_v53 = vcombine.high %v1450_v41, %v1450_v41  ;;  %v7499_v58 = vld [vmem:[%s7948_s1 + $0x20] sm:$0xff]  ;;  %v7524_v10 = vld [vmem:[%s7948_s1 + $0x28] sm:$0xff] }
  0xd8   : > { %6606 = vmatprep.subr.msk.mxu0 %vm359_vm0, %v1783_v39  ;;  %6609 = vmatprep.subr.msk.mxu1 %vm359_vm0, %v1784_v40  ;;  %v7481_v55 = vsel %vm361_vm1, %v7411_v49, %v377_v48  ;;  %v7484_v56 = vsel %vm448_vm3, %v434_v4, %v464_v52  ;;  %v1786_v49 = vcombine.high %v1451_v42, %v1451_v42  ;;  %v1452_v59 = vld [vmem:[#allocation3 + $0x4c] sm:$0xff]  ;;  %v1454_v4 = vld [vmem:[#allocation3 + $0x5c] sm:$0xff]  ;;  %v4412_v18 = vld [vmem:[#allocation3 + $0x34] sm:$0xff] }
  0xd9   : > { %1691 = vmatprep.mubr.f32.mxu0 %v7089_v24  ;;  %1762 = vmatprep.mubr.f32.mxu1 %v7089_v24  ;;  %396 = vst [vmem:[#allocation3 + $0x40] sm:$0xff] %v7481_v55  ;;  %484 = vst [vmem:[#allocation3 + $0x88] sm:$0xff] %v7484_v56  ;;  %v2104_v63 = vcombine.high %v1452_v59, %v1452_v59  ;;  %v2106_v6 = vcombine.high %v1454_v4, %v1454_v4  ;;  %v4414_v36 = vld [vmem:[#allocation3 + $0x6c] sm:$0xff] }
  0xda   : > { %6601 = vmatmul.mubr.msk.f32.vlgmr.msra.gmra.mrb[2].mxu0 %vm508_vm2, %v7453_v14  ;;  %6604 = vmatmul.mubr.msk.f32.vlgmr.msra.gmra.mrb[2].mxu1 %vm508_vm2, %v7453_v14  ;;  %v4745_v34 = vcombine.high %v4412_v18, %v4412_v18 }
  0xdb   : > { %6607 = vmatpush1.msk.msra.mxu0 %vm359_vm0, %v1448_v16  ;;  %6610 = vmatpush1.msk.msra.mxu1 %vm359_vm0, %v1449_v17  ;;  %v4411_v16 = vld [vmem:[#allocation3 + $0x2c] sm:$0xff] }
  0xdc   : > { %6612 = vmatprep.subr.msk.mxu0 %vm359_vm0, %v1785_v53  ;;  %6615 = vmatprep.subr.msk.mxu1 %vm359_vm0, %v1786_v49  ;;  %v4744_v17 = vcombine.high %v4411_v16, %v4411_v16  ;;  %v4415_v39 = vld [vmem:[#allocation3 + $0x74] sm:$0xff]  ;;  %v5398_v53 = vcombine.high %v7223_v29, %v7223_v29 }
  0xdd   : > { %1870 = vmatprep.mubr.f32.mxu0 %v7089_v24  ;;  %1941 = vmatprep.mubr.f32.mxu1 %v7089_v24  ;;  %v5064_v40 = vcombine.high %v4415_v39, %v4415_v39 }
  0xde   : > { %6608 = vmatmul.mubr.msk.f32.vlgmr.msra.gmra.mrb[0].mxu0 %vm508_vm2, %v7499_v58  ;;  %6611 = vmatmul.mubr.msk.f32.vlgmr.msra.gmra.mrb[0].mxu1 %vm508_vm2, %v7499_v58 }
  0xdf   : > { %6613 = vmatpush1.msk.msra.mxu0 %vm359_vm0, %v1450_v41  ;;  %6616 = vmatpush1.msk.msra.mxu1 %vm359_vm0, %v1451_v42  ;;  %v4416_v41 = vld [vmem:[#allocation3 + $0x7c] sm:$0xff] }
  0xe0   : > { %6619 = vmatprep.subr.msk.mxu0 %vm359_vm0, %v2104_v63  ;;  %6622 = vmatprep.subr.msk.mxu1 %vm359_vm0, %v2105_v3  ;;  %v4413_v30 = vld [vmem:[#allocation3 + $0x3c] sm:$0xff]  ;;  %v4417_v42 = vld [vmem:[#allocation3 + $0x84] sm:$0xff]  ;;  %v5065_v48 = vcombine.high %v4416_v41, %v4416_v41 }
  0xe1   : > { %2012 = vmatprep.mubr.f32.mxu0 %v7089_v24  ;;  %2083 = vmatprep.mubr.f32.mxu1 %v7089_v24  ;;  %v4746_v35 = vcombine.high %v4413_v30, %v4413_v30  ;;  %v5066_v52 = vcombine.high %v4417_v42, %v4417_v42 }
  0xe2   : > { %6614 = vmatmul.mubr.msk.f32.vlgmr.msra.gmra.mrb[2].mxu0 %vm508_vm2, %v7499_v58  ;;  %6617 = vmatmul.mubr.msk.f32.vlgmr.msra.gmra.mrb[2].mxu1 %vm508_vm2, %v7499_v58 }
  0xe3   : > { %6620 = vmatpush1.msk.msra.mxu0 %vm359_vm0, %v1452_v59  ;;  %6623 = vmatpush1.msk.msra.mxu1 %vm359_vm0, %v1453_v61 }
  0xe4   : > { %6625 = vmatprep.subr.msk.mxu0 %vm359_vm0, %v2106_v6  ;;  %6628 = vmatprep.subr.msk.mxu1 %vm359_vm0, %v2107_v9 }
  0xe5   : > { %2191 = vmatprep.mubr.f32.mxu0 %v7089_v24  ;;  %2262 = vmatprep.mubr.f32.mxu1 %v7089_v24 }
  0xe6   : > { %6621 = vmatmul.mubr.msk.f32.vlgmr.msra.gmra.mrb[0].mxu0 %vm508_vm2, %v7524_v10  ;;  %6624 = vmatmul.mubr.msk.f32.vlgmr.msra.gmra.mrb[0].mxu1 %vm508_vm2, %v7524_v10 }
  0xe7   : > { %6626 = vmatpush1.msk.msra.mxu0 %vm359_vm0, %v1454_v4  ;;  %6629 = vmatpush1.msk.msra.mxu1 %vm359_vm0, %v1455_v5 }
  0xe8   : > { %2333 = vmatprep.mubr.f32.mxu0 %v7089_v24  ;;  %2404 = vmatprep.mubr.f32.mxu1 %v7089_v24 }
  0xe9   : > { %6632 = vmatprep.subr.msk.mxu0 %vm359_vm0, %v7289_v62  ;;  %6635 = vmatprep.subr.msk.mxu1 %vm359_vm0, %v7311_v7  ;;  %v7557_v62 = vld [vmem:[%s7948_s1 + $0x30] sm:$0xff]  ;;  %v7739_v7 = vcombine.high %v7460_v21, %v7460_v21 }
  0xea   : > { %6627 = vmatmul.mubr.msk.f32.vlgmr.msra.gmra.mrb[2].mxu0 %vm508_vm2, %v7524_v10  ;;  %6630 = vmatmul.mubr.msk.f32.vlgmr.msra.gmra.mrb[2].mxu1 %vm508_vm2, %v7524_v10 }
  0xeb   : > { %6633 = vmatpush1.msk.msra.mxu0 %vm359_vm0, %v7188_v23  ;;  %6636 = vmatpush1.msk.msra.mxu1 %vm359_vm0, %v7175_v20  ;;  %v2761_v20 = vcombine.high %v7368_v32, %v7368_v32  ;;  %v3082_v23 = vcombine.high %v7364_v31, %v7364_v31 }
  0xec   : > { %2524 = vmatprep.mubr.f32.mxu0 %v7089_v24  ;;  %2595 = vmatprep.mubr.f32.mxu1 %v7089_v24 }
  0xed   : > { %6638 = vmatprep.subr.msk.mxu0 %vm359_vm0, %v7328_v11  ;;  %6641 = vmatprep.subr.msk.mxu1 %vm359_vm0, %v7544_v15  ;;  %v4406_v11 = vld [vmem:[%s7160_s17 + $0x24] sm:$0xff] }
  0xee   : > { %6634 = vmatmul.mubr.msk.f32.vlgmr.msra.gmra.mrb[0].mxu0 %vm508_vm2, %v7557_v62  ;;  %6637 = vmatmul.mubr.msk.f32.vlgmr.msra.gmra.mrb[0].mxu1 %vm508_vm2, %v7557_v62 }
  0xef   : > { %6639 = vmatpush1.msk.msra.mxu0 %vm359_vm0, %v7185_v22  ;;  %6642 = vmatpush1.msk.msra.mxu1 %vm359_vm0, %v7197_v25  ;;  %v7592_v22 = vld [vmem:[%s7948_s1 + $0x38] sm:$0xff] }
  0xf0   : > { %6645 = vmatprep.subr.msk.mxu0 %vm359_vm0, %v7250_v50  ;;  %6648 = vmatprep.subr.msk.mxu1 %vm359_vm0, %v7271_v57  ;;  %v7652_v50 = vcombine.high %v7438_v1, %v7438_v1  ;;  %v7674_v57 = vcombine.high %v7207_v26, %v7207_v26 }
  0xf1   : > { %2666 = vmatprep.mubr.f32.mxu0 %v7089_v24  ;;  %2737 = vmatprep.mubr.f32.mxu1 %v7089_v24 }
  0xf2   : > { %6640 = vmatmul.mubr.msk.f32.vlgmr.msra.gmra.mrb[2].mxu0 %vm508_vm2, %v7557_v62  ;;  %6643 = vmatmul.mubr.msk.f32.vlgmr.msra.gmra.mrb[2].mxu1 %vm508_vm2, %v7557_v62 }
  0xf3   : > { %6646 = vmatpush1.msk.msra.mxu0 %vm359_vm0, %v7241_v45  ;;  %6649 = vmatpush1.msk.msra.mxu1 %vm359_vm0, %v7237_v43  ;;  %v7626_v43 = vld [vmem:[%s7948_s1 + $0x40] sm:$0xff]  ;;  %v7639_v45 = vcombine.high %v7403_v46, %v7403_v46 }
  0xf4   : > { %6651 = vmatprep.subr.msk.mxu0 %vm359_vm0, %v7280_v60  ;;  %6654 = vmatprep.subr.msk.mxu1 %vm359_vm0, %v2761_v20  ;;  %v7692_v60 = vcombine.high %v7216_v28, %v7216_v28 }
  0xf5   : > { %2845 = vmatprep.mubr.f32.mxu0 %v7089_v24  ;;  %2916 = vmatprep.mubr.f32.mxu1 %v7089_v24 }
  0xf6   : > { %6647 = vmatmul.mubr.msk.f32.vlgmr.msra.gmra.mrb[0].mxu0 %vm508_vm2, %v7592_v22  ;;  %6650 = vmatmul.mubr.msk.f32.vlgmr.msra.gmra.mrb[0].mxu1 %vm508_vm2, %v7592_v22 }
  0xf7   : > { %6652 = vmatpush1.msk.msra.mxu0 %vm359_vm0, %v7264_v54  ;;  %6655 = vmatpush1.msk.msra.mxu1 %vm359_vm0, %v7368_v32  ;;  %v7660_v54 = vcombine.high %v7406_v47, %v7406_v47 }
  0xf8   : > { %6658 = vmatprep.subr.msk.mxu0 %vm359_vm0, %v7350_v19  ;;  %6661 = vmatprep.subr.msk.mxu1 %vm359_vm0, %v7388_v38  ;;  %v4408_v19 = vld [vmem:[%s7160_s17 + $0x34] sm:$0xff] }
  0xf9   : > { %2987 = vmatprep.mubr.f32.mxu0 %v7089_v24  ;;  %3058 = vmatprep.mubr.f32.mxu1 %v7089_v24  ;;  %v4410_v38 = vld [vmem:[#allocation3 + $0x24] sm:$0xff] }
  0xfa   : > { %6653 = vmatmul.mubr.msk.f32.vlgmr.msra.gmra.mrb[2].mxu0 %vm508_vm2, %v7592_v22  ;;  %6656 = vmatmul.mubr.msk.f32.vlgmr.msra.gmra.mrb[2].mxu1 %vm508_vm2, %v7592_v22 }
  0xfb   : > { %6659 = vmatpush1.msk.msra.mxu0 %vm359_vm0, %v7299_v2  ;;  %6662 = vmatpush1.msk.msra.mxu1 %vm359_vm0, %v7331_v12  ;;  %v7696_v2 = vcombine.high %v7213_v27, %v7213_v27  ;;  %v4407_v12 = vld [vmem:[%s7160_s17 + $0x2c] sm:$0xff] }
  0xfc   : > { %6664 = vmatprep.subr.msk.mxu0 %vm359_vm0, %v7380_v37  ;;  %6667 = vmatprep.subr.msk.mxu1 %vm359_vm0, %v3082_v23 }
  0xfd   : > { %3166 = vmatprep.mubr.f32.mxu0 %v7089_v24  ;;  %3237 = vmatprep.mubr.f32.mxu1 %v7089_v24 }
  0xfe   : > { %6660 = vmatmul.mubr.msk.f32.vlgmr.msra.gmra.mrb[0].mxu0 %vm508_vm2, %v7626_v43  ;;  %6663 = vmatmul.mubr.msk.f32.vlgmr.msra.gmra.mrb[0].mxu1 %vm508_vm2, %v7626_v43 }
  0xff   : > { %6665 = vmatpush1.msk.msra.mxu0 %vm359_vm0, %v7334_v13  ;;  %6668 = vmatpush1.msk.msra.mxu1 %vm359_vm0, %v7364_v31  ;;  %v4424_v13 = vcombine.high %v4407_v12, %v4407_v12 }
 0x100   : > { %6679 = vmatprep.subr.msk.mxu0 %vm359_vm0, %v2761_v20  ;;  %6682 = vmatprep.subr.msk.mxu1 %vm359_vm0, %v7639_v45 }
 0x101   : > { %3308 = vmatprep.mubr.f32.mxu0 %v7089_v24  ;;  %3379 = vmatprep.mubr.f32.mxu1 %v7089_v24 }
 0x102   : > { %6666 = vmatmul.mubr.msk.f32.vlgmr.msra.gmra.mrb[2].mxu0 %vm508_vm2, %v7626_v43  ;;  %6669 = vmatmul.mubr.msk.f32.vlgmr.msra.gmra.mrb[2].mxu1 %vm508_vm2, %v7626_v43 }
 0x103   : > { %6680 = vmatpush1.msk.msra.mxu0 %vm359_vm0, %v7368_v32  ;;  %6683 = vmatpush1.msk.msra.mxu1 %vm359_vm0, %v7403_v46  ;;  %v4425_v32 = vcombine.high %v4408_v19, %v4408_v19 }
 0x104   : > { %6685 = vmatprep.subr.msk.mxu0 %vm359_vm0, %v7660_v54  ;;  %3555 = vmatprep.mubr.f32.mxu0 %v7089_v24 }
 0x105   : > { %3626 = vmatprep.mubr.f32.mxu1 %v7089_v24  ;;  %6688 = vmatprep.subr.msk.mxu1 %vm359_vm0, %v7652_v50 }
 0x106   : > { %6681 = vmatmul.mubr.msk.f32.vlgmr.msra.gmra.mrb[4].mxu0 %vm508_vm2, %v7255_v51  ;;  %6684 = vmatmul.mubr.msk.f32.vlgmr.msra.gmra.mrb[4].mxu1 %vm508_vm2, %v7255_v51 }
 0x107   : > { %6686 = vmatpush1.msk.msra.mxu0 %vm359_vm0, %v7406_v47  ;;  %6689 = vmatpush1.msk.msra.mxu1 %vm359_vm0, %v7438_v1 }
 0x108   : > { %3697 = vmatprep.mubr.f32.mxu0 %v7089_v24  ;;  %3768 = vmatprep.mubr.f32.mxu1 %v7089_v24 }
 0x109   : > { %6691 = vmatprep.subr.msk.mxu0 %vm359_vm0, %v7544_v15  ;;  %6694 = vmatprep.subr.msk.mxu1 %vm359_vm0, %v7674_v57 }
 0x10a   : > { %6687 = vmatmul.mubr.msk.f32.vlgmr.msra.gmra.mrb[6].mxu0 %vm508_vm2, %v7255_v51  ;;  %6690 = vmatmul.mubr.msk.f32.vlgmr.msra.gmra.mrb[6].mxu1 %vm508_vm2, %v7255_v51  ;;  %v7731_v51 = vcombine.high %v7463_v33, %v7463_v33 }
 0x10b   : > { %6692 = vmatpush1.msk.msra.mxu0 %vm359_vm0, %v7197_v25  ;;  %6695 = vmatpush1.msk.msra.mxu1 %vm359_vm0, %v7207_v26  ;;  %v7718_v25 = vcombine.high %v7433_v0, %v7433_v0 }
 0x10c   : > { %3866 = vmatprep.mubr.f32.mxu0 %v7089_v24  ;;  %3937 = vmatprep.mubr.f32.mxu1 %v7089_v24 }
 0x10d   : > { %6697 = vmatprep.subr.msk.mxu0 %vm359_vm0, %v7692_v60  ;;  %6700 = vmatprep.subr.msk.mxu1 %vm359_vm0, %v7696_v2 }
 0x10e   : > { %6693 = vmatmul.mubr.msk.f32.vlgmr.msra.gmra.mrb[4].mxu0 %vm508_vm2, %v7319_v8  ;;  %6696 = vmatmul.mubr.msk.f32.vlgmr.msra.gmra.mrb[4].mxu1 %vm508_vm2, %v7319_v8 }
 0x10f   : > { %6698 = vmatpush1.msk.msra.mxu0 %vm359_vm0, %v7216_v28  ;;  %6701 = vmatpush1.msk.msra.mxu1 %vm359_vm0, %v7213_v27 }
 0x110   : > { %6704 = vmatprep.subr.msk.mxu0 %vm359_vm0, %v3082_v23  ;;  %6707 = vmatprep.subr.msk.mxu1 %vm359_vm0, %v7718_v25 }
 0x111   : > { %4008 = vmatprep.mubr.f32.mxu0 %v7089_v24  ;;  %4079 = vmatprep.mubr.f32.mxu1 %v7089_v24 }
 0x112   : > { %6699 = vmatmul.mubr.msk.f32.vlgmr.msra.gmra.mrb[6].mxu0 %vm508_vm2, %v7319_v8  ;;  %6702 = vmatmul.mubr.msk.f32.vlgmr.msra.gmra.mrb[6].mxu1 %vm508_vm2, %v7319_v8  ;;  %v4423_v8 = vcombine.high %v4406_v11, %v4406_v11 }
 0x113   : > { %6705 = vmatpush1.msk.msra.mxu0 %vm359_vm0, %v7364_v31  ;;  %6708 = vmatpush1.msk.msra.mxu1 %vm359_vm0, %v7433_v0  ;;  %v4409_v31 = vld [vmem:[%s7160_s17 + $0x3c] sm:$0xff] }
 0x114   : > { %6710 = vmatprep.subr.msk.mxu0 %vm359_vm0, %v7739_v7  ;;  %4178 = vmatprep.mubr.f32.mxu0 %v7089_v24  ;;  %v4426_v37 = vcombine.high %v4409_v31, %v4409_v31 }
 0x115   : > { %4249 = vmatprep.mubr.f32.mxu1 %v7089_v24  ;;  %6713 = vmatprep.subr.msk.mxu1 %vm359_vm0, %v7731_v51 }
 0x116   : > { %6706 = vmatmul.mubr.msk.f32.vlgmr.msra.gmra.mrb[4].mxu0 %vm508_vm2, %v7400_v44  ;;  %6709 = vmatmul.mubr.msk.f32.vlgmr.msra.gmra.mrb[4].mxu1 %vm508_vm2, %v7400_v44 }
 0x117   : > { %6711 = vmatpush1.msk.msra.mxu0 %vm359_vm0, %v7460_v21  ;;  %6714 = vmatpush1.msk.msra.mxu1 %vm359_vm0, %v7463_v33 }
 0x118   : > { %4320 = vmatprep.mubr.f32.mxu0 %v7089_v24  ;;  %4391 = vmatprep.mubr.f32.mxu1 %v7089_v24 }
 0x119   : > { %6717 = vmatprep.subr.msk.mxu0 %vm359_vm0, %v4423_v8  ;;  %6720 = vmatprep.subr.msk.mxu1 %vm359_vm0, %v4424_v13 }
 0x11a   : > { %6712 = vmatmul.mubr.msk.f32.vlgmr.msra.gmra.mrb[6].mxu0 %vm508_vm2, %v7400_v44  ;;  %6715 = vmatmul.mubr.msk.f32.vlgmr.msra.gmra.mrb[6].mxu1 %vm508_vm2, %v7400_v44  ;;  %v4743_v44 = vcombine.high %v4410_v38, %v4410_v38 }
 0x11b   : > { %6718 = vmatpush1.msk.msra.mxu0 %vm359_vm0, %v4406_v11  ;;  %6721 = vmatpush1.msk.msra.mxu1 %vm359_vm0, %v4407_v12 }
 0x11c   : > { %4510 = vmatprep.mubr.f32.mxu0 %v7089_v24  ;;  %4581 = vmatprep.mubr.f32.mxu1 %v7089_v24 }
 0x11d   : > { %6723 = vmatprep.subr.msk.mxu0 %vm359_vm0, %v4425_v32  ;;  %6726 = vmatprep.subr.msk.mxu1 %vm359_vm0, %v4426_v37 }
 0x11e   : > { %6719 = vmatmul.mubr.msk.f32.vlgmr.msra.gmra.mrb[4].mxu0 %vm508_vm2, %v7453_v14  ;;  %6722 = vmatmul.mubr.msk.f32.vlgmr.msra.gmra.mrb[4].mxu1 %vm508_vm2, %v7453_v14 }
 0x11f   : > { %6724 = vmatpush1.msk.msra.mxu0 %vm359_vm0, %v4408_v19  ;;  %6727 = vmatpush1.msk.msra.mxu1 %vm359_vm0, %v4409_v31 }
 0x120   : > { %6730 = vmatprep.subr.msk.mxu0 %vm359_vm0, %v4743_v44  ;;  %6733 = vmatprep.subr.msk.mxu1 %vm359_vm0, %v4744_v17 }
 0x121   : > { %4652 = vmatprep.mubr.f32.mxu0 %v7089_v24  ;;  %4723 = vmatprep.mubr.f32.mxu1 %v7089_v24 }
 0x122   : > { %6725 = vmatmul.mubr.msk.f32.vlgmr.msra.gmra.mrb[6].mxu0 %vm508_vm2, %v7453_v14  ;;  %6728 = vmatmul.mubr.msk.f32.vlgmr.msra.gmra.mrb[6].mxu1 %vm508_vm2, %v7453_v14  ;;  %v5063_v14 = vcombine.high %v4414_v36, %v4414_v36 }
 0x123   : > { %6731 = vmatpush1.msk.msra.mxu0 %vm359_vm0, %v4410_v38  ;;  %6734 = vmatpush1.msk.msra.mxu1 %vm359_vm0, %v4411_v16 }
 0x124   : > { %6736 = vmatprep.subr.msk.mxu0 %vm359_vm0, %v4745_v34  ;;  %6739 = vmatprep.subr.msk.mxu1 %vm359_vm0, %v4746_v35 }
 0x125   : > { %4830 = vmatprep.mubr.f32.mxu0 %v7089_v24  ;;  %4901 = vmatprep.mubr.f32.mxu1 %v7089_v24 }
 0x126   : > { %6732 = vmatmul.mubr.msk.f32.vlgmr.msra.gmra.mrb[4].mxu0 %vm508_vm2, %v7499_v58  ;;  %6735 = vmatmul.mubr.msk.f32.vlgmr.msra.gmra.mrb[4].mxu1 %vm508_vm2, %v7499_v58 }
 0x127   : > { %6737 = vmatpush1.msk.msra.mxu0 %vm359_vm0, %v4412_v18  ;;  %6740 = vmatpush1.msk.msra.mxu1 %vm359_vm0, %v4413_v30 }
 0x128   : > { %6743 = vmatprep.subr.msk.mxu0 %vm359_vm0, %v5063_v14  ;;  %6746 = vmatprep.subr.msk.mxu1 %vm359_vm0, %v5064_v40 }
 0x129   : > { %4972 = vmatprep.mubr.f32.mxu0 %v7089_v24  ;;  %5043 = vmatprep.mubr.f32.mxu1 %v7089_v24 }
 0x12a   : > { %6738 = vmatmul.mubr.msk.f32.vlgmr.msra.gmra.mrb[6].mxu0 %vm508_vm2, %v7499_v58  ;;  %6741 = vmatmul.mubr.msk.f32.vlgmr.msra.gmra.mrb[6].mxu1 %vm508_vm2, %v7499_v58 }
 0x12b   : > { %6744 = vmatpush1.msk.msra.mxu0 %vm359_vm0, %v4414_v36  ;;  %6747 = vmatpush1.msk.msra.mxu1 %vm359_vm0, %v4415_v39 }
 0x12c   : > { %6749 = vmatprep.subr.msk.mxu0 %vm359_vm0, %v5065_v48  ;;  %6752 = vmatprep.subr.msk.mxu1 %vm359_vm0, %v5066_v52 }
 0x12d   : > { %5150 = vmatprep.mubr.f32.mxu0 %v7089_v24  ;;  %5221 = vmatprep.mubr.f32.mxu1 %v7089_v24 }
 0x12e   : > { %6745 = vmatmul.mubr.msk.f32.vlgmr.msra.gmra.mrb[4].mxu0 %vm508_vm2, %v7524_v10  ;;  %6748 = vmatmul.mubr.msk.f32.vlgmr.msra.gmra.mrb[4].mxu1 %vm508_vm2, %v7524_v10 }
 0x12f   : > { %6750 = vmatpush1.msk.msra.mxu0 %vm359_vm0, %v4416_v41  ;;  %6753 = vmatpush1.msk.msra.mxu1 %vm359_vm0, %v4417_v42 }
 0x130   : > { %5292 = vmatprep.mubr.f32.mxu0 %v7089_v24  ;;  %5363 = vmatprep.mubr.f32.mxu1 %v7089_v24 }
 0x131   : > { %6756 = vmatprep.subr.msk.mxu0 %vm359_vm0, %v7674_v57  ;;  %6759 = vmatprep.subr.msk.mxu1 %vm359_vm0, %v7692_v60 }
 0x132   : > { %6751 = vmatmul.mubr.msk.f32.vlgmr.msra.gmra.mrb[6].mxu0 %vm508_vm2, %v7524_v10  ;;  %6754 = vmatmul.mubr.msk.f32.vlgmr.msra.gmra.mrb[6].mxu1 %vm508_vm2, %v7524_v10 }
 0x133   : > { %6757 = vmatpush1.msk.msra.mxu0 %vm359_vm0, %v7207_v26  ;;  %6760 = vmatpush1.msk.msra.mxu1 %vm359_vm0, %v7216_v28  ;;  %v5718_v26 = vcombine.high %v7481_v55, %v7481_v55 }
 0x134   : > { %5482 = vmatprep.mubr.f32.mxu0 %v7089_v24  ;;  %5553 = vmatprep.mubr.f32.mxu1 %v7089_v24 }
 0x135   : > { %6762 = vmatprep.subr.msk.mxu0 %vm359_vm0, %v7696_v2  ;;  %6765 = vmatprep.subr.msk.mxu1 %vm359_vm0, %v5398_v53 }
 0x136   : > { %6758 = vmatmul.mubr.msk.f32.vlgmr.msra.gmra.mrb[4].mxu0 %vm508_vm2, %v7557_v62  ;;  %6761 = vmatmul.mubr.msk.f32.vlgmr.msra.gmra.mrb[4].mxu1 %vm508_vm2, %v7557_v62 }
 0x137   : > { %6763 = vmatpush1.msk.msra.mxu0 %vm359_vm0, %v7213_v27  ;;  %6766 = vmatpush1.msk.msra.mxu1 %vm359_vm0, %v7223_v29  ;;  %v6038_v27 = vcombine.high %v7484_v56, %v7484_v56 }
 0x138   : > { %6769 = vmatprep.subr.msk.mxu0 %vm359_vm0, %v7639_v45  ;;  %6772 = vmatprep.subr.msk.mxu1 %vm359_vm0, %v7660_v54 }
 0x139   : > { %5624 = vmatprep.mubr.f32.mxu0 %v7089_v24  ;;  %5695 = vmatprep.mubr.f32.mxu1 %v7089_v24 }
 0x13a   : > { %6764 = vmatmul.mubr.msk.f32.vlgmr.msra.gmra.mrb[6].mxu0 %vm508_vm2, %v7557_v62  ;;  %6767 = vmatmul.mubr.msk.f32.vlgmr.msra.gmra.mrb[6].mxu1 %vm508_vm2, %v7557_v62 }
 0x13b   : > { %6770 = vmatpush1.msk.msra.mxu0 %vm359_vm0, %v7403_v46  ;;  %6773 = vmatpush1.msk.msra.mxu1 %vm359_vm0, %v7406_v47 }
 0x13c   : > { %6775 = vmatprep.subr.msk.mxu0 %vm359_vm0, %v7652_v50  ;;  %6778 = vmatprep.subr.msk.mxu1 %vm359_vm0, %v5718_v26 }
 0x13d   : > { %5802 = vmatprep.mubr.f32.mxu0 %v7089_v24  ;;  %5873 = vmatprep.mubr.f32.mxu1 %v7089_v24 }
 0x13e   : > { %6771 = vmatmul.mubr.msk.f32.vlgmr.msra.gmra.mrb[4].mxu0 %vm508_vm2, %v7592_v22  ;;  %6774 = vmatmul.mubr.msk.f32.vlgmr.msra.gmra.mrb[4].mxu1 %vm508_vm2, %v7592_v22 }
 0x13f   : > { %6776 = vmatpush1.msk.msra.mxu0 %vm359_vm0, %v7438_v1  ;;  %6779 = vmatpush1.msk.msra.mxu1 %vm359_vm0, %v7481_v55 }
 0x140   : > { %6782 = vmatprep.subr.msk.mxu0 %vm359_vm0, %v7718_v25  ;;  %6785 = vmatprep.subr.msk.mxu1 %vm359_vm0, %v7739_v7 }
 0x141   : > { %5944 = vmatprep.mubr.f32.mxu0 %v7089_v24  ;;  %6015 = vmatprep.mubr.f32.mxu1 %v7089_v24 }
 0x142   : > { %6777 = vmatmul.mubr.msk.f32.vlgmr.msra.gmra.mrb[6].mxu0 %vm508_vm2, %v7592_v22  ;;  %6780 = vmatmul.mubr.msk.f32.vlgmr.msra.gmra.mrb[6].mxu1 %vm508_vm2, %v7592_v22 }
 0x143   : > { %6783 = vmatpush1.msk.msra.mxu0 %vm359_vm0, %v7433_v0  ;;  %6786 = vmatpush1.msk.msra.mxu1 %vm359_vm0, %v7460_v21 }
 0x144   : > { %6788 = vmatprep.subr.msk.mxu0 %vm359_vm0, %v7731_v51  ;;  %6791 = vmatprep.subr.msk.mxu1 %vm359_vm0, %v6038_v27 }
 0x145   : > { %6122 = vmatprep.mubr.f32.mxu0 %v7089_v24  ;;  %6193 = vmatprep.mubr.f32.mxu1 %v7089_v24 }
 0x146   : > { %6784 = vmatmul.mubr.msk.f32.vlgmr.msra.gmra.mrb[4].mxu0 %vm508_vm2, %v7626_v43  ;;  %6787 = vmatmul.mubr.msk.f32.vlgmr.msra.gmra.mrb[4].mxu1 %vm508_vm2, %v7626_v43 }
 0x147   : > { %6789 = vmatpush1.msk.msra.mxu0 %vm359_vm0, %v7463_v33  ;;  %6792 = vmatpush1.msk.msra.mxu1 %vm359_vm0, %v7484_v56 }
 0x148   : > { %6264 = vmatprep.mubr.f32.mxu0 %v7089_v24  ;;  %6335 = vmatprep.mubr.f32.mxu1 %v7089_v24 }
 0x14a   : > { %6790 = vmatmul.mubr.msk.f32.vlgmr.msra.gmra.mrb[6].mxu0 %vm508_vm2, %v7626_v43  ;;  %6793 = vmatmul.mubr.msk.f32.vlgmr.msra.gmra.mrb[6].mxu1 %vm508_vm2, %v7626_v43 }
 0x1d1   : > { %v3168_v28 = vpop.f32.mrb[0].mxu0  ;;  %v3239_v29 = vpop.f32.mrb[0].mxu1 }
 0x1d2   : > { %v3394_v46 = vmin.f32 %v3168_v28, 0.0  ;;  %v3396_v47 = vmin.f32 %v3239_v29, 0.0  ;;  %v3170_v0 = vpop.f32.mrb[1].mxu0  ;;  %v3241_v1 = vpop.f32.mrb[1].mxu1  ;;  %vm3426_vm4 = vcmp.gt.f32.partialorder %v3168_v28, 0.0  ;;  %vm3428_vm5 = vcmp.gt.f32.partialorder %v3239_v29, 0.0 }
 0x1d3   : > { %v3395_v21 = vmin.f32 %v3170_v0, 0.0  ;;  %v3397_v33 = vmin.f32 %v3241_v1, 0.0  ;;  %vm3427_vm6 = vcmp.gt.f32.partialorder %v3170_v0, 0.0  ;;  %vm3429_vm7 = vcmp.gt.f32.partialorder %v3241_v1, 0.0 }
 0x1d4   : > { %v3402_v55 = vmul.f32 1.442695, %v3394_v46  ;;  %v3406_v56 = vmul.f32 1.442695, %v3396_v47 }
 0x1d5   : > { %v3404_v49 = vmul.f32 1.442695, %v3395_v21  ;;  %v3408_v58 = vmul.f32 1.442695, %v3397_v33  ;;  %v3310_v59 = vpop.f32.mrb[2].mxu0  ;;  %v3381_v24 = vpop.f32.mrb[2].mxu1 }
 0x1d6   : > { %7014 = vpow2.f32 %v3402_v55  ;;  %v3398_v61 = vmin.f32 %v3310_v59, 0.0  ;;  %v3400_v63 = vmin.f32 %v3381_v24, 0.0  ;;  %v3312_v3 = vpop.f32.mrb[3].mxu0  ;;  %v3383_v4 = vpop.f32.mrb[3].mxu1  ;;  %vm3430_vm8 = vcmp.gt.f32.partialorder %v3310_v59, 0.0 }
 0x1d7   : > { %7016 = vpow2.f32 %v3406_v56  ;;  %v3399_v5 = vmin.f32 %v3312_v3, 0.0  ;;  %v3401_v10 = vmin.f32 %v3383_v4, 0.0  ;;  %vm3432_vm9 = vcmp.gt.f32.partialorder %v3381_v24, 0.0 }
 0x1d8   : > { %7018 = vpow2.f32 %v3404_v49  ;;  %v3410_v6 = vmul.f32 1.442695, %v3398_v61  ;;  %v3414_v9 = vmul.f32 1.442695, %v3400_v63  ;;  %vm3431_vm10 = vcmp.gt.f32.partialorder %v3312_v3, 0.0 }
 0x1d9   : > { %7020 = vpow2.f32 %v3408_v58  ;;  %v3412_v15 = vmul.f32 1.442695, %v3399_v5  ;;  %v3416_v62 = vmul.f32 1.442695, %v3401_v10  ;;  %vm3433_vm11 = vcmp.gt.f32.partialorder %v3383_v4, 0.0 }
 0x1da   : > { %7022 = vpow2.f32 %v3410_v6 }
 0x1db   : > { %7024 = vpow2.f32 %v3414_v9 }
 0x1dc   : > { %7026 = vpow2.f32 %v3412_v15 }
 0x1dd   : > { %7028 = vpow2.f32 %v3416_v62 }
 0x1e0   : > { %v7015_v20 = vpop.eup %7014 }
 0x1e1   : > { %v7017_v22 = vpop.eup %7016  ;;  %v6670_v23 = vadd.f32 -1.0, %v7015_v20 }
 0x1e2   : > { %v7019_v43 = vpop.eup %7018  ;;  %v6672_v45 = vadd.f32 -1.0, %v7017_v22 }
 0x1e3   : > { %v7021_v50 = vpop.eup %7020  ;;  %v3434_v54 = vsel %vm3426_vm4, %v3168_v28, %v6670_v23  ;;  %v6671_v57 = vadd.f32 -1.0, %v7019_v43 }
 0x1e4   : > { %v7023_v60 = vpop.eup %7022  ;;  %3442 = vst [vmem:[%s7149_s26] sm:$0xff] %v3434_v54  ;;  %v3436_v2 = vsel %vm3428_vm5, %v3239_v29, %v6672_v45  ;;  %v6673_v25 = vadd.f32 -1.0, %v7021_v50 }
 0x1e5   : > { %v7025_v51 = vpop.eup %7024  ;;  %3444 = vst [vmem:[%s7149_s26 + $0x10] sm:$0xff] %v3436_v2  ;;  %v3435_v7 = vsel %vm3427_vm6, %v3170_v0, %v6671_v57  ;;  %v6674_v11 = vadd.f32 -1.0, %v7023_v60 }
 0x1e6   : > { %v7027_v12 = vpop.eup %7026  ;;  %3443 = vst [vmem:[%s7149_s26 + $0x8] sm:$0xff] %v3435_v7  ;;  %v3437_v8 = vsel %vm3429_vm7, %v3241_v1, %v6673_v25  ;;  %v6676_v13 = vadd.f32 -1.0, %v7025_v51 }
 0x1e7   : > { %v7029_v19 = vpop.eup %7028  ;;  %3445 = vst [vmem:[%s7149_s26 + $0x18] sm:$0xff] %v3437_v8  ;;  %v3438_v31 = vsel %vm3430_vm8, %v3310_v59, %v6674_v11  ;;  %v6675_v32 = vadd.f32 -1.0, %v7027_v12 }
 0x1e8   : > { %3446 = vst [vmem:[%s7149_s26 + $0x20] sm:$0xff] %v3438_v31  ;;  %v3440_v37 = vsel %vm3432_vm9, %v3381_v24, %v6676_v13  ;;  %v6677_v38 = vadd.f32 -1.0, %v7029_v19 }
 0x1e9   : > { %3448 = vst [vmem:[%s7149_s26 + $0x30] sm:$0xff] %v3440_v37  ;;  %v3439_v16 = vsel %vm3431_vm10, %v3312_v3, %v6675_v32 }
 0x1ea   : > { %3447 = vst [vmem:[%s7149_s26 + $0x28] sm:$0xff] %v3439_v16  ;;  %v3441_v44 = vsel %vm3433_vm11, %v3383_v4, %v6677_v38 }
 0x1eb   : > { %3449 = vst [vmem:[%s7149_s26 + $0x38] sm:$0xff] %v3441_v44 }
 0x219   : > { %v6124_v17 = vpop.f32.mrb[4].mxu0  ;;  %v6195_v18 = vpop.f32.mrb[4].mxu1 }
 0x21a   : > { %v6350_v30 = vmin.f32 %v6124_v17, 0.0  ;;  %v6352_v34 = vmin.f32 %v6195_v18, 0.0  ;;  %v6126_v35 = vpop.f32.mrb[5].mxu0  ;;  %v6197_v36 = vpop.f32.mrb[5].mxu1  ;;  %vm6382_vm12 = vcmp.gt.f32.partialorder %v6124_v17, 0.0  ;;  %vm6384_vm13 = vcmp.gt.f32.partialorder %v6195_v18, 0.0 }
 0x21b   : > { %v6351_v39 = vmin.f32 %v6126_v35, 0.0  ;;  %v6353_v14 = vmin.f32 %v6197_v36, 0.0  ;;  %vm6383_vm14 = vcmp.gt.f32.partialorder %v6126_v35, 0.0  ;;  %vm6385_vm15 = vcmp.gt.f32.partialorder %v6197_v36, 0.0 }
 0x21c   : > { %v6358_v40 = vmul.f32 1.442695, %v6350_v30  ;;  %v6362_v41 = vmul.f32 1.442695, %v6352_v34 }
 0x21d   : > { %v6360_v42 = vmul.f32 1.442695, %v6351_v39  ;;  %v6364_v48 = vmul.f32 1.442695, %v6353_v14  ;;  %v6266_v52 = vpop.f32.mrb[6].mxu0  ;;  %v6337_v53 = vpop.f32.mrb[6].mxu1 }
 0x21e   : > { %7030 = vpow2.f32 %v6358_v40  ;;  %v6354_v26 = vmin.f32 %v6266_v52, 0.0  ;;  %v6356_v27 = vmin.f32 %v6337_v53, 0.0  ;;  %v6268_v28 = vpop.f32.mrb[7].mxu0  ;;  %v6339_v29 = vpop.f32.mrb[7].mxu1  ;;  %vm6386_vm0 = vcmp.gt.f32.partialorder %v6266_v52, 0.0 }
 0x21f   : > { %7032 = vpow2.f32 %v6362_v41  ;;  %v6355_v46 = vmin.f32 %v6268_v28, 0.0  ;;  %v6357_v1 = vmin.f32 %v6339_v29, 0.0  ;;  %vm6388_vm1 = vcmp.gt.f32.partialorder %v6337_v53, 0.0 }
 0x220   : > { %7034 = vpow2.f32 %v6360_v42  ;;  %v6366_v47 = vmul.f32 1.442695, %v6354_v26  ;;  %v6370_v0 = vmul.f32 1.442695, %v6356_v27  ;;  %vm6387_vm2 = vcmp.gt.f32.partialorder %v6268_v28, 0.0 }
 0x221   : > { %7036 = vpow2.f32 %v6364_v48  ;;  %v6368_v21 = vmul.f32 1.442695, %v6355_v46  ;;  %v6372_v33 = vmul.f32 1.442695, %v6357_v1  ;;  %vm6389_vm3 = vcmp.gt.f32.partialorder %v6339_v29, 0.0 }
 0x222   : > { %7038 = vpow2.f32 %v6366_v47 }
 0x223   : > { %7040 = vpow2.f32 %v6370_v0 }
 0x224   : > { %7042 = vpow2.f32 %v6368_v21 }
 0x225   : > { %7044 = vpow2.f32 %v6372_v33 }
 0x228   : > { %v7031_v55 = vpop.eup %7030 }
 0x229   : > { %v7033_v56 = vpop.eup %7032  ;;  %v6794_v49 = vadd.f32 -1.0, %v7031_v55 }
 0x22a   : > { %v7035_v58 = vpop.eup %7034  ;;  %v6796_v59 = vadd.f32 -1.0, %v7033_v56 }
 0x22b   : > { %v7037_v24 = vpop.eup %7036  ;;  %v6390_v61 = vsel %vm6382_vm12, %v6124_v17, %v6794_v49  ;;  %v6795_v63 = vadd.f32 -1.0, %v7035_v58 }
 0x22c   : > { %v7039_v3 = vpop.eup %7038  ;;  %6398 = vst [vmem:[%s7149_s26 + $0x40] sm:$0xff] %v6390_v61  ;;  %v6392_v4 = vsel %vm6384_vm13, %v6195_v18, %v6796_v59  ;;  %v6797_v5 = vadd.f32 -1.0, %v7037_v24 }
 0x22d   : > { %v7041_v6 = vpop.eup %7040  ;;  %6400 = vst [vmem:[%s7149_s26 + $0x50] sm:$0xff] %v6392_v4  ;;  %v6391_v9 = vsel %vm6383_vm14, %v6126_v35, %v6795_v63  ;;  %v6798_v10 = vadd.f32 -1.0, %v7039_v3 }
 0x22e   : > { %v7043_v15 = vpop.eup %7042  ;;  %6399 = vst [vmem:[%s7149_s26 + $0x48] sm:$0xff] %v6391_v9  ;;  %v6393_v62 = vsel %vm6385_vm15, %v6197_v36, %v6797_v5  ;;  %v6800_v20 = vadd.f32 -1.0, %v7041_v6 }
 0x22f   : > { %v7045_v22 = vpop.eup %7044  ;;  %6401 = vst [vmem:[%s7149_s26 + $0x58] sm:$0xff] %v6393_v62  ;;  %v6394_v23 = vsel %vm6386_vm0, %v6266_v52, %v6798_v10  ;;  %v6799_v43 = vadd.f32 -1.0, %v7043_v15 }
 0x230   : > { %6402 = vst [vmem:[%s7149_s26 + $0x60] sm:$0xff] %v6394_v23  ;;  %v6396_v45 = vsel %vm6388_vm1, %v6337_v53, %v6800_v20  ;;  %v6801_v50 = vadd.f32 -1.0, %v7045_v22 }
 0x231   : > { %6404 = vst [vmem:[%s7149_s26 + $0x70] sm:$0xff] %v6396_v45  ;;  %v6395_v54 = vsel %vm6387_vm2, %v6268_v28, %v6799_v43 }
 0x232   : > { %6403 = vst [vmem:[%s7149_s26 + $0x68] sm:$0xff] %v6395_v54  ;;  %v6397_v57 = vsel %vm6389_vm3, %v6339_v29, %v6801_v50 }
 0x233   : > { %6405 = vst [vmem:[%s7149_s26 + $0x78] sm:$0xff] %v6397_v57 }
 0x234 PF: > { %s12_s13 = sadd.s32 1, %s7086_s13   ;;  %s7950_s9 = smov %s7078_s11 }
 0x235   : > { %p9_p11 = scmp.ge.s32.totalorder %s12_s13, 6   ;;  %s7951_s10 = smov %s7082_s12 }
 0x236   : > { %s7952_s11 = smov %s7955_s14  ;;  %s7953_s12 = smov %s7959_s15 }
 0x237   :  { %11 = sbr.rel (!%p9_p11) target bundleno = 3 (0x3), region = 177 }
 0x23e   :  { %6436 = vsyncmov [#allocation4] }
 0x241   :  { %s6437_s26 = vpop.sfrf %6436 }
 0x242   :  { %p6804_p12 = scmp.ne.s32.totalorder %s6437_s26, 0 }
 0x244   :  { %6441 = shalt.err (%p6804_p12)  }
 0x245   :  { %6443 = vsyncmov [#allocation4 + $0x1] }
 0x248   :  { %s6444_s17 = vpop.sfrf %6443 }
 0x249   :  { %p6805_p13 = scmp.ne.s32.totalorder %s6444_s17, 0 }
 0x24b   :  { %6448 = shalt.err (%p6805_p13)  }

</bundles_post_ra>
